<compile_context>
chip_gen: v7x
topology: tpu7x:2x2x1
jax: 0.10.0
libtpu: 0.0.40
codegen_flags: <defaults>
</compile_context>

<pallas_src>
import jax
import jax.numpy as jnp
from jax.experimental import pallas as pl
from jax.experimental.pallas import tpu as pltpu


# ---------------------------------------------------------------------------
# Kernel A: tiled GCN encoder pass  H_cat = PReLU(a_hat @ [XW | SW])
#           + fused per-row-block column sums for the readout
# ---------------------------------------------------------------------------
def _make_encoder_kernel(xw_resident):
    def kernel(ahat_ref, xw_ref, alpha_ref, h_ref, rsum_ref):
        k = pl.program_id(1)

        @pl.when(k == 0)
        def _init():
            h_ref[...] = jnp.zeros_like(h_ref)

        if xw_resident:
            # XW is VMEM-resident across the whole grid; slice the k-th block.
            tk = ahat_ref.shape[1]
            start = pl.multiple_of(k * tk, tk)
            xw_blk = xw_ref[pl.ds(start, tk), :]                 # (tk, 2H) bf16
        else:
            # Per-k pipelined block (large-N / v7x fallback).
            xw_blk = xw_ref[...]                                 # (tk, 2H) bf16

        # Accumulate directly into the resident f32 output block (no scratch).
        h_ref[...] += jnp.dot(ahat_ref[...], xw_blk,
                              preferred_element_type=jnp.float32)

        @pl.when(k == pl.num_programs(1) - 1)
        def _finalize():
            alpha = alpha_ref[0, 0]                              # scalar (SMEM)
            h = h_ref[...]                                       # (TM, 2H) f32
            h_act = jnp.where(h > 0, h, h * alpha)               # PReLU in place
            h_ref[...] = h_act
            # Fused readout partial sums (full 2H width; glue keeps [:H]).
            colsum = jnp.sum(h_act, axis=0, keepdims=True)       # (1, 2H)
            rsum_ref[...] = jnp.broadcast_to(colsum[None], rsum_ref.shape)
    return kernel


def encoder_pallas(a_hat_bf16, xw_cat_bf16, alpha, *, tm, tk,
                   xw_resident, vmem_limit):
    n = a_hat_bf16.shape[0]
    h2 = xw_cat_bf16.shape[1]
    assert n % tm == 0 and n % tk == 0
    grid = (n // tm, n // tk)

    if xw_resident:
        xw_spec = pl.BlockSpec(memory_space=pltpu.MemorySpace.VMEM)
    else:
        xw_spec = pl.BlockSpec((tk, h2), lambda i, k: (k, 0))

    return pl.pallas_call(
        _make_encoder_kernel(xw_resident),
        out_shape=(
            jax.ShapeDtypeStruct((n, h2), jnp.float32),          # h_cat
            jax.ShapeDtypeStruct((grid[0], 8, h2), jnp.float32), # readout sums
        ),
        grid_spec=pltpu.PrefetchScalarGridSpec(
            num_scalar_prefetch=0,
            grid=grid,
            in_specs=[
                pl.BlockSpec((tm, tk), lambda i, k: (i, k)),         # a_hat
                xw_spec,                                             # [XW | SW]
                pl.BlockSpec(memory_space=pltpu.MemorySpace.SMEM),   # PReLU alpha
            ],
            out_specs=[
                pl.BlockSpec((tm, h2), lambda i, k: (i, 0)),
                pl.BlockSpec((1, 8, h2), lambda i, k: (i, 0, 0)),
            ],
        ),
        compiler_params=pltpu.CompilerParams(
            dimension_semantics=("parallel", "arbitrary"),
            vmem_limit_bytes=vmem_limit),
    )(a_hat_bf16, xw_cat_bf16, alpha)


# ---------------------------------------------------------------------------
# Kernel B: row-tiled logits + BCEWithLogits reduction to a scalar
# ---------------------------------------------------------------------------
def _make_bce_kernel(inv_n2, hdim):
    def kernel(hcat_ref, u_ref, loss_ref, acc_ref):
        i = pl.program_id(0)

        @pl.when(i == 0)
        def _init():
            acc_ref[...] = jnp.zeros_like(acc_ref)

        h = hcat_ref[...]                                        # (tm, 2H) f32
        hu = h * u_ref[...]                                      # one mul by [u, u]
        lane = jax.lax.broadcasted_iota(jnp.int32, hu.shape, 1)
        is_pos = lane < hdim
        z_pos = jnp.sum(jnp.where(is_pos, hu, 0.0), axis=1, keepdims=True)  # (tm,1)
        z_neg = jnp.sum(jnp.where(is_pos, 0.0, hu), axis=1, keepdims=True)  # (tm,1)
        # BCEWithLogits, stable: y=1 -> softplus(-z), y=0 -> softplus(z)
        sp_pos = (jnp.maximum(z_pos, 0.0) - z_pos
                  + jnp.log1p(jnp.exp(-jnp.abs(z_pos))))
        sp_neg = jnp.maximum(z_neg, 0.0) + jnp.log1p(jnp.exp(-jnp.abs(z_neg)))
        acc_ref[...] += jnp.sum(sp_pos + sp_neg, axis=0, keepdims=True)

        @pl.when(i == pl.num_programs(0) - 1)
        def _finalize():
            loss_ref[...] = acc_ref[...] * inv_n2
    return kernel


def bce_pallas(h_cat, u_tiled, hdim, *, tm):
    n, h2 = h_cat.shape
    assert n % tm == 0
    inv_n2 = 1.0 / (2.0 * n)         # mean over 2N logits
    # TODO(synk): on v7x with very large N, add a leading size-2 "parallel"
    # grid axis with a per-core partial-loss output to use both TensorCores;
    # kernel B is O(N*2H) and negligible next to kernel A here.
    return pl.pallas_call(
        _make_bce_kernel(inv_n2, hdim),
        out_shape=jax.ShapeDtypeStruct((1, 1), jnp.float32),
        grid=(n // tm,),
        in_specs=[
            pl.BlockSpec((tm, h2), lambda i: (i, 0)),
            pl.BlockSpec((1, h2), lambda i: (0, 0)),
        ],
        out_specs=pl.BlockSpec((1, 1), lambda i: (0, 0)),
        scratch_shapes=[pltpu.VMEM((1, 1), jnp.float32)],
        compiler_params=pltpu.CompilerParams(
            dimension_semantics=("arbitrary",)),
    )(h_cat, u_tiled)[0, 0]


# ---------------------------------------------------------------------------
# Full DGI loss pipeline
# ---------------------------------------------------------------------------
def dgi_loss_pallas(x, shuf_x, a_hat_bf16, w, bil, alpha, *,
                    tm=512, tk=256, tm_b=512):
    n = x.shape[0]
    hdim = w.shape[1]
    h2 = 2 * hdim
    tm, tk, tm_b = min(tm, n), min(tk, n), min(tm_b, n)

    # Prologue glue (O(N*F*H), tiny vs the O(N^2*H) a_hat pass): project real
    # and shuffled features once and concatenate so a_hat is streamed exactly
    # once at 2H output lane width, already in bf16.
    xw_cat = jnp.concatenate([x @ w, shuf_x @ w], axis=1).astype(jnp.bfloat16)

    # VMEM budget (v7x has 64 MiB/TC, 32 MiB default scoped limit): keep the
    # bf16 [XW|SW] fully VMEM-resident when small, else per-k pipelined tiles.
    xw_bytes = xw_cat.size * 2
    xw_resident = xw_bytes <= (16 << 20)
    est = (2 * tm * tk * 2                                   # a_hat double-buffer
           + (xw_bytes if xw_resident else 2 * tk * h2 * 2)  # XW
           + 2 * tm * h2 * 4                                 # h_cat out block
           + 2 * 8 * h2 * 4                                  # readout out block
           + (2 << 20))                                      # headroom
    vmem_limit = int(min(max(est, 32 << 20), 64 << 20))

    h_cat, rsum = encoder_pallas(a_hat_bf16, xw_cat, alpha, tm=tm, tk=tk,
                                 xw_resident=xw_resident, vmem_limit=vmem_limit)

    # Readout + bilinear fold: column sums of PReLU(h1) were produced inside
    # kernel A's finalize (no N*H re-read of h_cat); only an (N/TM, H) reduce
    # and an O(H^2) matvec remain.
    col_sum = jnp.sum(rsum[:, 0, :hdim], axis=0)                    # (H,)
    s = jax.nn.sigmoid(col_sum / n)                                 # (H,)
    u = bil @ s                                                     # (H,)
    u_tiled = jnp.concatenate([u, u])[None, :].astype(jnp.float32)  # (1, 2H)
    return bce_pallas(h_cat, u_tiled, hdim, tm=tm_b)


def dgi_loss_ref(x, shuf_x, a_hat_bf16, w, bil, alpha):
    """Pure-JAX reference (PyTorch DGI forward + BCEWithLogitsLoss), with the
    same bf16 quantization of the MXU-streamed operands as the kernel."""
    a = alpha[0, 0]
    hdim = w.shape[1]
    xw = jnp.concatenate([x @ w, shuf_x @ w], axis=1).astype(jnp.bfloat16)
    h_cat = a_hat_bf16.astype(jnp.float32) @ xw.astype(jnp.float32)
    h_cat = jnp.where(h_cat > 0, h_cat, a * h_cat)
    h1, h2_ = h_cat[:, :hdim], h_cat[:, hdim:]
    s = jax.nn.sigmoid(jnp.mean(h1, axis=0))
    u = bil @ s
    logit_pos = jnp.sum(h1 * u[None, :], axis=1)
    logit_neg = jnp.sum(h2_ * u[None, :], axis=1)
    logits = jnp.concatenate([logit_pos, logit_neg])
    lbl = jnp.concatenate([jnp.ones_like(logit_pos), jnp.zeros_like(logit_neg)])
    return jnp.mean(jnp.maximum(logits, 0.0) - logits * lbl
                    + jnp.log1p(jnp.exp(-jnp.abs(logits))))


def build_a_hat_bf16(edge_index, num_nodes):
    """Dense normalized adjacency D^-1/2 (A + I) D^-1/2 (GCNConv default),
    emitted directly in bf16 (cast fuses into the final normalization multiply
    so no separate f32->bf16 pass over the N^2 matrix is needed)."""
    # TODO(synk): for genuinely sparse graphs, replace the dense N^2 a_hat with
    # a scalar-prefetch CSR/SpMM kernel; densification is the algorithmic
    # ceiling of this loss.
    a = jnp.zeros((num_nodes, num_nodes), jnp.float32)
    a = a.at[edge_index[0], edge_index[1]].set(1.0)
    a = a.at[edge_index[1], edge_index[0]].set(1.0)
    a = a + jnp.eye(num_nodes, dtype=jnp.float32)
    d_inv_sqrt = jax.lax.rsqrt(jnp.sum(a, axis=1))
    return (a * d_inv_sqrt[:, None] * d_inv_sqrt[None, :]).astype(jnp.bfloat16)


if __name__ == "__main__":
    N, F, H = 512, 64, 64          # small demo; 2H = 128 (lane-dense)
    key = jax.random.PRNGKey(0)
    k_x, k_perm, k_w, k_b = jax.random.split(key, 4)

    # data.x and a small deterministic ring graph as edge_index
    x = jax.random.normal(k_x, (N, F), dtype=jnp.float32)
    src = jnp.arange(N, dtype=jnp.int32)
    dst = (src + 1) % N
    edge_index = jnp.stack([src, dst])                       # (2, N)
    a_hat = build_a_hat_bf16(edge_index, N)                  # bf16 upstream

    # shuf_fts = x[randperm(N)]  (gather stays in JAX glue)
    perm = jax.random.permutation(k_perm, N)
    shuf_x = x[perm, :]

    # TODO(synk): `model` is an external argument in the PyTorch module; a
    # standard DGI model (GCN + PReLU + bilinear discriminator, no bias) is
    # instantiated here deterministically.
    w = jax.random.normal(k_w, (F, H), dtype=jnp.float32) * 0.1
    bil = jax.random.normal(k_b, (H, H), dtype=jnp.float32) * 0.1
    alpha = jnp.full((1, 1), 0.25, dtype=jnp.float32)        # PReLU default slope

    # Small tiles here so the demo exercises multi-row-block / multi-k paths;
    # production defaults are tm=512, tk=256 (clamped to N).
    loss = dgi_loss_pallas(x, shuf_x, a_hat, w, bil, alpha,
                           tm=256, tk=256, tm_b=256)
    jax.block_until_ready(loss)

    ref = dgi_loss_ref(x, shuf_x, a_hat, w, bil, alpha)
    assert jnp.allclose(loss, ref, atol=5e-4, rtol=5e-4), (loss, ref)

    print("KERNEL_OK")
</pallas_src>

<mosaic_0001>
module attributes {stable_mosaic.version = 11 : i64} {
  func.func @kernel(%arg0: i32, %arg1: i32, %arg2: memref<256x256xbf16, #tpu.memory_space<vmem>>, %arg3: memref<512x128xbf16, #tpu.memory_space<vmem>>, %arg4: memref<1x1xf32, #tpu.memory_space<smem>>, %arg5: memref<256x128xf32, #tpu.memory_space<vmem>>, %arg6: memref<1x8x128xf32, #tpu.memory_space<vmem>>) attributes {dimension_semantics = [#tpu.dimension_semantics<parallel>, #tpu.dimension_semantics<arbitrary>], iteration_bounds = array<i64: 2, 2>, scalar_prefetch = 0 : i64, scratch_operands = 0 : i64, tpu.core_type = #tpu.core_type<tc>, window_params = [{transform_indices = @transform_0, window_bounds = array<i64: 256, 256>}, {pipeline_mode = #tpu.pipeline_mode<synchronous>, transform_indices = @transform_1, window_bounds = array<i64: 512, 128>}, {transform_indices = @transform_2, window_bounds = array<i64: 1, 1>}, {transform_indices = @transform_3, window_bounds = array<i64: 256, 128>}, {transform_indices = @transform_4, window_bounds = array<i64: 1, 8, 128>}]} {
    %c0_i32 = arith.constant 0 : i32
    %0 = arith.cmpi eq, %arg1, %c0_i32 : i32
    %1 = arith.extui %0 : i1 to i32
    %c0_i32_0 = arith.constant 0 : i32
    %2 = arith.cmpi ne, %1, %c0_i32_0 : i32
    scf.if %2 {
      %cst_8 = arith.constant 0.000000e+00 : f32
      %15 = vector.broadcast %cst_8 : f32 to vector<256x128xf32>
      %c0_9 = arith.constant 0 : index
      %c0_10 = arith.constant 0 : index
      %16 = vector.load %arg5[%c0_9, %c0_10] : memref<256x128xf32, #tpu.memory_space<vmem>>, vector<256x128xf32>
      tpu.vector_store %arg5[%c0_9, %c0_10], %15 {strides = array<i32>} : memref<256x128xf32, #tpu.memory_space<vmem>>, vector<256x128xf32>,
    } else {
    }
    %c256_i32 = arith.constant 256 : i32
    %3 = arith.muli %arg1, %c256_i32 : i32
    %4 = tpu.assume_multiple %3, 256 : i32
    %5 = arith.index_cast %4 : i32 to index
    %c0 = arith.constant 0 : index
    %6 = vector.load %arg3[%5, %c0] : memref<512x128xbf16, #tpu.memory_space<vmem>>, vector<256x128xbf16>
    %c0_1 = arith.constant 0 : index
    %c0_2 = arith.constant 0 : index
    %7 = vector.load %arg5[%c0_1, %c0_2] : memref<256x128xf32, #tpu.memory_space<vmem>>, vector<256x128xf32>
    %c0_3 = arith.constant 0 : index
    %c0_4 = arith.constant 0 : index
    %8 = vector.load %arg2[%c0_3, %c0_4] : memref<256x256xbf16, #tpu.memory_space<vmem>>, vector<256x256xbf16>
    %cst = arith.constant dense<0.000000e+00> : vector<256x128xf32>
    %9 = tpu.matmul %8, %6, %cst {dimension_numbers = #tpu.dot_dimension_numbers<[1], [0], [0], [1], [0, 0, 1, 1], [], []>} : vector<256x256xbf16>, vector<256x128xbf16>, vector<256x128xf32> -> vector<256x128xf32>
    %10 = arith.addf %7, %9 : vector<256x128xf32>
    %c0_5 = arith.constant 0 : index
    %c0_6 = arith.constant 0 : index
    %11 = vector.load %arg5[%c0_5, %c0_6] : memref<256x128xf32, #tpu.memory_space<vmem>>, vector<256x128xf32>
    tpu.vector_store %arg5[%c0_5, %c0_6], %10 {strides = array<i32>} : memref<256x128xf32, #tpu.memory_space<vmem>>, vector<256x128xf32>,
    %c1_i32 = arith.constant 1 : i32
    %12 = arith.cmpi eq, %arg1, %c1_i32 : i32
    %13 = arith.extui %12 : i1 to i32
    %c0_i32_7 = arith.constant 0 : i32
    %14 = arith.cmpi ne, %13, %c0_i32_7 : i32
    scf.if %14 {
      %c0_8 = arith.constant 0 : index
      %c0_9 = arith.constant 0 : index
      %15 = memref.load %arg4[%c0_8, %c0_9] : memref<1x1xf32, #tpu.memory_space<smem>>
      %c0_10 = arith.constant 0 : index
      %c0_11 = arith.constant 0 : index
      %16 = vector.load %arg5[%c0_10, %c0_11] : memref<256x128xf32, #tpu.memory_space<vmem>>, vector<256x128xf32>
      %cst_12 = arith.constant 0.000000e+00 : f32
      %17 = vector.broadcast %cst_12 : f32 to vector<256x128xf32>
      %18 = arith.cmpf ogt, %16, %17 : vector<256x128xf32>
      %19 = vector.broadcast %15 : f32 to vector<256x128xf32>
      %20 = arith.mulf %16, %19 : vector<256x128xf32>
      %21 = arith.select %18, %16, %20 : vector<256x128xi1>, vector<256x128xf32>
      %c0_13 = arith.constant 0 : index
      %c0_14 = arith.constant 0 : index
      %22 = vector.load %arg5[%c0_13, %c0_14] : memref<256x128xf32, #tpu.memory_space<vmem>>, vector<256x128xf32>
      tpu.vector_store %arg5[%c0_13, %c0_14], %21 {strides = array<i32>} : memref<256x128xf32, #tpu.memory_space<vmem>>, vector<256x128xf32>,
      %cst_15 = arith.constant dense<0.000000e+00> : vector<128xf32>
      %23 = vector.multi_reduction <add>, %21, %cst_15 [0] : vector<256x128xf32> to vector<128xf32>
      %24 = vector.shape_cast %23 : vector<128xf32> to vector<1x128xf32>
      %25 = vector.shape_cast %24 : vector<1x128xf32> to vector<1x1x128xf32>
      %26 = vector.shape_cast %25 : vector<1x1x128xf32> to vector<1x1x128xf32>
      %27 = vector.broadcast %26 : vector<1x1x128xf32> to vector<1x8x128xf32>
      %c0_16 = arith.constant 0 : index
      %c0_17 = arith.constant 0 : index
      %c0_18 = arith.constant 0 : index
      %28 = vector.load %arg6[%c0_16, %c0_17, %c0_18] : memref<1x8x128xf32, #tpu.memory_space<vmem>>, vector<1x8x128xf32>
      tpu.vector_store %arg6[%c0_16, %c0_17, %c0_18], %27 {strides = array<i32>} : memref<1x8x128xf32, #tpu.memory_space<vmem>>, vector<1x8x128xf32>,
    } else {
    }
    return
  }
  func.func @transform_0(%arg0: i32, %arg1: i32) -> (i32, i32) {
    %c0_i32 = arith.constant 0 : i32
    return %arg0, %arg1 : i32, i32
  }
  func.func @transform_1(%arg0: i32, %arg1: i32) -> (i32, i32) {
    %c0_i32 = arith.constant 0 : i32
    %c0_i32_0 = arith.constant 0 : i32
    %c0_i32_1 = arith.constant 0 : i32
    return %c0_i32, %c0_i32_0 : i32, i32
  }
  func.func @transform_2(%arg0: i32, %arg1: i32) -> (i32, i32) {
    %c0_i32 = arith.constant 0 : i32
    %c0_i32_0 = arith.constant 0 : i32
    %c0_i32_1 = arith.constant 0 : i32
    return %c0_i32, %c0_i32_0 : i32, i32
  }
  func.func @transform_3(%arg0: i32, %arg1: i32) -> (i32, i32) {
    %c0_i32 = arith.constant 0 : i32
    %c0_i32_0 = arith.constant 0 : i32
    return %arg0, %c0_i32 : i32, i32
  }
  func.func @transform_4(%arg0: i32, %arg1: i32) -> (i32, i32, i32) {
    %c0_i32 = arith.constant 0 : i32
    %c0_i32_0 = arith.constant 0 : i32
    %c0_i32_1 = arith.constant 0 : i32
    return %arg0, %c0_i32, %c0_i32_0 : i32, i32, i32
  }
}

</mosaic_0001>

<bundles_post_ra>
// kernel: tpu_custom_call.1
= control target key start
LH: loop header
LB: loop body
LE: loop exit
PB: predicated region body
PF: predicated region fallthrough
CT: control target
= control target key end

     0   :  { %s2543_s0 = inlined_call_operand.hbm [shape: bf16[512,512], index: 0, kind: input, shape index: {}]   ;;  %s2544_s1 = inlined_call_operand.hbm [shape: bf16[512,128], index: 1, kind: input, shape index: {}]   ;;  %s2545_s2 = inlined_call_operand.<no memory space> [shape: f32[1,1], index: 2, kind: input, shape index: {}]   ;;  %s2546_s3 = inlined_call_operand.hbm [shape: f32[512,128], index: 3, kind: output, shape index: {0}]   ;;  %s2547_s4 = inlined_call_operand.hbm [shape: f32[2,8,128], index: 4, kind: output, shape index: {1}]  }
   0x1   :  { %2559 = sst [smem:[#allocation20_spill]] %s2544_s1 }
   0x2   :  { %10 = sst [smem:[#allocation2]] %s2545_s2 }
   0x3   :  { %11 = vsyncpa [#allocation4], 0 }
   0x4   :  { %13 = vsyncpa [#allocation4 + $0x1], 0 }
   0x5   :  { %14 = vsyncpa [#allocation7], 0 }
   0x6   :  { %15 = vsyncpa [#allocation5], 0 }
   0x7   :  { %17 = vsyncpa [#allocation5 + $0x1], 0 }
   0x8   :  { %18 = vsyncpa [#allocation10], 0 }
   0x9   :  { %20 = vsyncpa [#allocation10 + $0x1], 0  ;;  %s1901_s17 = smov 0   ;;  %s1903_s18 = smov 0  }
   0xa   :  { %s1905_s19 = smov 0   ;;  %s1907_s20 = smov 0  }
   0xb   :  { %s1909_s21 = smov 0   ;;  %s1911_s22 = smov 0  }
   0xc   :  { %s1913_s2 = smov 0   ;;  %s1915_s23 = smov 0  }
   0xd   :  { %s1917_s24 = smov 0   ;;  %s1919_s25 = smov 0  }
   0xe   :  { %s1921_s26 = smov 0  }
   0xf LB: > { %2560 = sst [smem:[#allocation15_spill]] %s1819_s17  ;;  %s1249_s27 = sadd.s32 4294967295, %s1859_s26   ;;  %s1859_s26 = sphi %s1921_s26, %s26_s26   ;;  %s1855_s25 = sphi %s1919_s25, %s2596_s25   ;;  %s1851_s24 = sphi %s1917_s24, %s2587_s24   ;;  %s1847_s23 = sphi %s1915_s23, %s2595_s23   ;;  %s1843_s2 = sphi %s1913_s2, %s2586_s2   ;;  %s1839_s22 = sphi %s1911_s22, %s2594_s22   ;;  %s1835_s21 = sphi %s1909_s21, %s2593_s21   ;;  %s1831_s20 = sphi %s1907_s20, %s2592_s20   ;;  %s1827_s19 = sphi %s1905_s19, %s2591_s19   ;;  %s1823_s18 = sphi %s1903_s18, %s2590_s18   ;;  %s1819_s17 = sphi %s1901_s17, %s2589_s17  }
  0x10   : > { %2561 = sst [smem:[#allocation16_spill]] %s1851_s24  ;;  %s1250_s28 = sadd.s32 4294967294, %s1859_s26  }
  0x11   : > { %p54_p0 = scmp.ne.s32.totalorder %s1839_s22, %s1835_s21  ;;  %p55_p1 = scmp.eq.s32.totalorder %s1859_s26, 0 }
  0x12   : > { %p60_p2 = scmp.ne.s32.totalorder %s1835_s21, %s1831_s20  ;;  %p1961_p3 = scmp.eq.s32.totalorder %s1249_s27, 0 }
  0x13   : > { %p1966_p4 = por %p55_p1, %p54_p0  ;;  %p125_p5 = scmp.ne.s32.totalorder %s1827_s19, %s1823_s18 }
  0x14   : > { %s2562_s30 = scalar_select %p1961_p3, 1, 0 }
  0x15   : > { %p1974_p6 = por %p1961_p3, %p60_p2  ;;  %p126_p7 = scmp.eq.s32.totalorder %s1249_s27, 3 }
  0x16   : > { %p131_p8 = scmp.ne.s32.totalorder %s1823_s18, %s1819_s17  ;;  %p132_p9 = scmp.eq.s32.totalorder %s1250_s28, 3 }
  0x17   : > { %s2564_s7 = scalar_select %p1974_p6, 1, 0 }
  0x18   : > { %p1980_p10 = por %p126_p7, %p125_p5  ;;  %p1251_p11 = scmp.ge.s32.totalorder %s1859_s26, 1 }
  0x19   : > { %p1985_p12 = por %p132_p9, %p131_p8  ;;  %p165_p13 = scmp.lt.s32.totalorder %s1859_s26, 5 }
  0x1a   : > { %s2565_s8 = scalar_select %p1980_p10, 1, 0 }
  0x1b   : > { %s2566_s9 = scalar_select %p1985_p12, 1, 0 }
  0x1c   : > { %p1990_p0 = pnand %p1251_p11, %p165_p13  ;;  %s1861_s11 = smov [#allocation6]  }
  0x1d   : > { %2567 = sst [smem:[#allocation17_spill]] %s2566_s9  ;;  %s177_s12 = sshll.u32 %s1861_s11, 4  ;;  %s178_s12 = int_to_ptr.vmem [resolvable:$true] %s177_s12 }
  0x1e   : > { %s2568_s10 = scalar_select %p1990_p0, 1, 0 }
  0x1f   : > { %p1463_p1 = pneg %p1990_p0  ;;  %p1479_p2 = scmp.lt.s32.totalorder %s1859_s26, 4 }
  0x20   : > { %s2571_s1 = sld [smem:[#allocation20_spill]] }
  0x21   : > { %p1999_p5 = pnand %p1463_p1, %p1961_p3  ;;  %p2005_p7 = pnand %p1479_p2, %p1966_p4 }
  0x23   : > { %s2570_s14 = scalar_select %p2005_p7, 1, 0 }
  0x24   : > { %p1645_p9 = pneg %p1999_p5 }
  0x26   : > { %s1643_s20 = scalar_lea.hbm %s2571_s1, 4096 }
  0x27   : > { %p1644_p8 = scmp.ne.s32.totalorder %s2571_s1, %s1643_s20  ;;  %p1650_p1 = scmp.lt.u32.totalorder %s1643_s20, %s2571_s1 }
  0x29   : > { %p1646_p11 = pnand %p1645_p9, %p1644_p8 }
  0x2b   : > { %p1647_p13 = pneg %p1646_p11 }
  0x2d   : > { %p1652_p4 = pnand %p1650_p1, %p1647_p13 }
  0x2f   : > { %1655 = shalt.err (!%p1652_p4)
}
  0x30   : > { %s1656_s6 = scalar_lea.vmem %s178_s12, 4096  ;;  %p1664_p3 = scmp.lt.s32.totalorder %s178_s12, %s178_s12 }
  0x31   : > { %p1657_p2 = scmp.ne.s32.totalorder %s178_s12, %s1656_s6  ;;  %p1665_p6 = scmp.lt.s32.totalorder %s1656_s6, %s1656_s6 }
  0x33   : > { %p1659_p12 = pnand %p1657_p2, %p1645_p9  ;;  %p1666_p0 = por %p1665_p6, %p1664_p3 }
  0x35   : > { %p1660_p10 = pneg %p1659_p12 }
  0x37   : > { %p1667_p7 = pnand %p1666_p0, %p1660_p10 }
  0x39   : > { %1670 = shalt.err (!%p1667_p7)
}
  0x3a   : > { %s1862_s15 = smov 64   ;;  %s1863_s29 = smov 4  }
  0x3b   : > { %1466 = dma.hbm_to_vmem [thread:$0]  (!%p1999_p5), %s2571_s1, 4096, %s178_s12, [#allocation7], %s1862_s15, %s1862_s15, %s1863_s29  }
  0x3c   : > { %s35_s27 = sadd.s32 1, %s1851_s24  ;;  %s38_s28 = sadd.s32 1, %s1855_s25 }
  0x3d   : > { %p36_p3 = scmp.ge.s32.totalorder %s35_s27, 2  ;;  %s194_s11 = sand.u32 1, %s1839_s22  }
  0x3e   : > { %s1254_s6 = sshll.u32 %s194_s11, 8  ;;  %s1256_s13 = sshll.u32 %s1851_s24, 1 }
  0x3f   : > { %s2598_s27 = smov (%p36_p3, %s35_s27), 0  ;;  %s2600_s28 = smov (!%p36_p3, %s38_s28), %s1855_s25 }
  0x40   : > { %2572 = sst [smem:[#allocation18_spill]] %s2598_s27  ;;  %s43_s5 = ssub.s32 %s1851_s24, %s2598_s27 }
  0x41   : > { %p40_p6 = scmp.ge.s32.totalorder %s2600_s28, 2  ;;  %s1323_s9 = sshll.u32 %s1855_s25, 7 }
  0x42   : > { %s198_s16 = scalar_lea.vmem [#allocation3], %s1254_s6  ;;  %s205_s15 = sadd.s32 %s1323_s9, %s1256_s13 }
  0x43   : > { %s208_s12 = sshll.u32 %s198_s16, 4  ;;  %s2602_s28 = smov (%p40_p6, %s2600_s28), 0  ;;  %s2037_s12 = int_to_ptr.vmem [resolvable:$true] %s208_s12 }
  0x44   : > { %2573 = sst [smem:[#allocation19_spill]] %s2602_s28  ;;  %s42_s29 = ssub.s32 %s1855_s25, %s2602_s28 }
  0x45   : > { %s1258_s20 = sshll.u32 %s205_s15, 6  ;;  %s44_s1 = sor.u32 %s43_s5, %s42_s29 }
  0x46   : > { %p113_p10 = scmp.eq.s32.totalorder %s42_s29, 0  ;;  %p45_p12 = scmp.eq.s32.totalorder %s44_s1, 0 }
  0x47   : > { %s2044_s24 = scalar_lea.hbm %s2543_s0, %s1258_s20  ;;  %s2574_s6 = sadd.s32 1, %s1827_s19 }
  0x48   : > { %s2049_s16 = scalar_select %p113_p10, %s1827_s19, %s2574_s6  }
  0x49   : > { %s2575_s9 = sadd.s32 1, %s1839_s22  ;;  %s2056_s28 = scalar_lea.sflag [#allocation4], %s194_s11 }
  0x4a   : > { %s2054_s13 = scalar_select %p45_p12, %s1839_s22, %s2575_s9  }
  0x4b   : > { %s1671_s5 = scalar_lea.hbm %s2044_s24, 4096  ;;  %p2576_p5 = scmp.ne.s32.totalorder %s2570_s14, 0 }
  0x4c   : > { %p1672_p0 = scmp.ne.s32.totalorder %s2044_s24, %s1671_s5  ;;  %s1676_s27 = scalar_lea.hbm %s2543_s0, 16384 }
  0x4d   : > { %p1673_p7 = pneg %p2576_p5  ;;  %p1677_p11 = scmp.lt.u32.totalorder %s2044_s24, %s2543_s0 }
  0x4e   : > { %p1678_p13 = scmp.lt.u32.totalorder %s1676_s27, %s1671_s5  ;;  %p1680_p4 = scmp.lt.u32.totalorder %s1671_s5, %s2044_s24 }
  0x4f   : > { %p1674_p8 = pnand %p1673_p7, %p1672_p0 }
  0x50   : > { %p1679_p1 = por %p1678_p13, %p1677_p11 }
  0x51   : > { %p1675_p9 = pneg %p1674_p8 }
  0x52   : > { %p1681_p2 = por %p1680_p4, %p1679_p1 }
  0x54   : > { %p1682_p3 = pnand %p1681_p2, %p1675_p9 }
  0x56   : > { %1685 = shalt.err (!%p1682_p3)
}
  0x57   : > { %s1686_s11 = scalar_lea.vmem %s2037_s12, 4096  ;;  %s1864_s20 = smov [#allocation3]  }
  0x58   : > { %p1687_p6 = scmp.ne.s32.totalorder %s2037_s12, %s1686_s11  ;;  %s1691_s6 = sshll.u32 %s1864_s20, 4  ;;  %s1692_s6 = int_to_ptr.vmem [resolvable:$false] %s1691_s6 }
  0x59   : > { %s1693_s9 = scalar_lea.vmem %s1692_s6, 8192  ;;  %p1694_p0 = scmp.lt.s32.totalorder %s2037_s12, %s1692_s6 }
  0x5a   : > { %p1689_p10 = pnand %p1687_p6, %p1673_p7  ;;  %p1695_p8 = scmp.lt.s32.totalorder %s1693_s9, %s1686_s11 }
  0x5c   : > { %p1690_p12 = pneg %p1689_p10  ;;  %p1696_p11 = por %p1695_p8, %p1694_p0 }
  0x5e   : > { %p1697_p13 = pnand %p1696_p11, %p1690_p12 }
  0x60   : > { %1700 = shalt.err (!%p1697_p13)
}
  0x61   : > { %s1865_s5 = smov 256   ;;  %s1866_s1 = smov 128  }
  0x62   : > { %s1867_s17 = smov 8   ;;  %p2577_p7 = scmp.ne.s32.totalorder %s2568_s10, 0 }
  0x63   : > { %1470 = dma.hbm_to_vmem [thread:$0]  (!%p2576_p5), %s2044_s24, 4096, %s2037_s12, %s2056_s28, %s1865_s5, %s1866_s1, %s1867_s17  }
  0x64   : > { %220 = sbr.rel (%p2577_p7) target bundleno = 561 (0x231), region = 32  ;;  %s222_s27 = sand.u32 (!%p2577_p7), 1, %s1835_s21  }
  0x65   : > { %s1260_s15 = sshll.u32 (!%p2577_p7), %s222_s27, 8  ;;  %s223_s29 = scalar_lea.sflag (!%p2577_p7), [#allocation4], %s222_s27 }
  0x66   : > { %s2087_s11 = scalar_lea.vmem (!%p2577_p7), [#allocation3], %s1260_s15  ;;  %p2578_p9 = scmp.ne.s32.totalorder (!%p2577_p7), %s2564_s7, 0 }
  0x6b   : > { %1802 = dma.done.wait (%p2578_p9), %s223_s29, 4096  }
  0x6c   : > { %1804 = vsyncadd (%p2578_p9), %s223_s29, 4294963200  ;;  %p2579_p1 = scmp.ne.s32.totalorder %s2562_s30, 0 }
  0x6e   : > { %1806 = dma.done.wait (%p2579_p1), [#allocation7], 4096  }
  0x6f   : > { %1808 = vsyncadd (%p2579_p1), [#allocation7], 4294963200  ;;  %s2098_s24 = sand.u32 1, %s1823_s18   ;;  %p1264_p5 = scmp.ne.s32.totalorder %s1843_s2, 0 }
  0x70   : > { %s1262_s10 = sshll.u32 %s2098_s24, 8  ;;  %s1263_s14 = sshll.u32 %s2098_s24, 3  ;;  %v1868_v0 = vmov (!%p1264_p5), 0.0  }
  0x71   : > { %s2102_s28 = scalar_lea.vmem [#allocation8], %s1262_s10  ;;  %s2104_s12 = scalar_lea.vmem [#allocation9], %s1263_s14 }
  0x72   : > { %267 = sbr.rel (%p1264_p5) target bundleno = 130 (0x82), region = 44  ;;  %268 = vst [vmem:[%s2102_s28] sm:$0xff] (!%p1264_p5), %v1868_v0  ;;  %269 = vst [vmem:[%s2102_s28 + $0x8] sm:$0xff] (!%p1264_p5), %v1868_v0 }
  0x73   : > { %270 = vst [vmem:[%s2102_s28 + $0x10] sm:$0xff] (!%p1264_p5), %v1868_v0  ;;  %271 = vst [vmem:[%s2102_s28 + $0x18] sm:$0xff] (!%p1264_p5), %v1868_v0 }
  0x74   : > { %272 = vst [vmem:[%s2102_s28 + $0x20] sm:$0xff] (!%p1264_p5), %v1868_v0  ;;  %273 = vst [vmem:[%s2102_s28 + $0x28] sm:$0xff] (!%p1264_p5), %v1868_v0 }
  0x75   : > { %274 = vst [vmem:[%s2102_s28 + $0x30] sm:$0xff] (!%p1264_p5), %v1868_v0  ;;  %275 = vst [vmem:[%s2102_s28 + $0x38] sm:$0xff] (!%p1264_p5), %v1868_v0 }
  0x76   : > { %276 = vst [vmem:[%s2102_s28 + $0x40] sm:$0xff] (!%p1264_p5), %v1868_v0  ;;  %277 = vst [vmem:[%s2102_s28 + $0x48] sm:$0xff] (!%p1264_p5), %v1868_v0 }
  0x77   : > { %278 = vst [vmem:[%s2102_s28 + $0x50] sm:$0xff] (!%p1264_p5), %v1868_v0  ;;  %279 = vst [vmem:[%s2102_s28 + $0x58] sm:$0xff] (!%p1264_p5), %v1868_v0 }
  0x78   : > { %280 = vst [vmem:[%s2102_s28 + $0x60] sm:$0xff] (!%p1264_p5), %v1868_v0  ;;  %281 = vst [vmem:[%s2102_s28 + $0x68] sm:$0xff] (!%p1264_p5), %v1868_v0 }
  0x79   : > { %282 = vst [vmem:[%s2102_s28 + $0x70] sm:$0xff] %v1868_v0  ;;  %283 = vst [vmem:[%s2102_s28 + $0x78] sm:$0xff] %v1868_v0 }
  0x7a   : > { %284 = vst [vmem:[%s2102_s28 + $0x80] sm:$0xff] %v1868_v0  ;;  %285 = vst [vmem:[%s2102_s28 + $0x88] sm:$0xff] %v1868_v0 }
  0x7b   : > { %286 = vst [vmem:[%s2102_s28 + $0x90] sm:$0xff] %v1868_v0  ;;  %287 = vst [vmem:[%s2102_s28 + $0x98] sm:$0xff] %v1868_v0 }
  0x7c   : > { %288 = vst [vmem:[%s2102_s28 + $0xa0] sm:$0xff] %v1868_v0  ;;  %289 = vst [vmem:[%s2102_s28 + $0xa8] sm:$0xff] %v1868_v0 }
  0x7d   : > { %290 = vst [vmem:[%s2102_s28 + $0xb0] sm:$0xff] %v1868_v0  ;;  %291 = vst [vmem:[%s2102_s28 + $0xb8] sm:$0xff] %v1868_v0 }
  0x7e   : > { %292 = vst [vmem:[%s2102_s28 + $0xc0] sm:$0xff] %v1868_v0  ;;  %293 = vst [vmem:[%s2102_s28 + $0xc8] sm:$0xff] %v1868_v0 }
  0x7f   : > { %294 = vst [vmem:[%s2102_s28 + $0xd0] sm:$0xff] %v1868_v0  ;;  %295 = vst [vmem:[%s2102_s28 + $0xd8] sm:$0xff] %v1868_v0 }
  0x80   : > { %296 = vst [vmem:[%s2102_s28 + $0xe0] sm:$0xff] %v1868_v0  ;;  %297 = vst [vmem:[%s2102_s28 + $0xe8] sm:$0xff] %v1868_v0 }
  0x81   : > { %298 = vst [vmem:[%s2102_s28 + $0xf0] sm:$0xff] %v1868_v0  ;;  %299 = vst [vmem:[%s2102_s28 + $0xf8] sm:$0xff] %v1868_v0 }
  0x82 PF: > { %s1265_s30 = sshll.u32 %s1843_s2, 8  ;;  %v1597_v1 = vld [vmem:[%s2087_s11 + $0x4] ss:$8 sps:$4 sm:$0xff]   ;;  %v1595_v19 = vld [vmem:[%s2087_s11] ss:$8 sps:$4 sm:$0xff]   ;;  %p1315_p4 = scmp.ne.s32.totalorder %s1843_s2, 1 }
  0x83   : > { %s301_s7 = sshra.s32 %s1265_s30, 3  ;;  %v1600_v2 = vld [vmem:[%s2087_s11 + $0x84] ss:$8 sps:$4 sm:$0xff]   ;;  %689 = vmatprep.mubr.bf16.mxu0 %v1597_v1  ;;  %v1598_v20 = vld [vmem:[%s2087_s11 + $0x80] ss:$8 sps:$4 sm:$0xff]   ;;  %s2255_s9 = sld [smem:[#allocation2]] (!%p1315_p4) }
  0x84   : > { %s1266_s20 = sshll.u32 %s301_s7, 2  ;;  %753 = vmatprep.mubr.bf16.mxu1 %v1600_v2  ;;  %v1601_v21 = vld [vmem:[%s2087_s11 + $0x14] ss:$8 sps:$4 sm:$0xff]   ;;  %v1605_v23 = vld [vmem:[%s2087_s11 + $0x10] ss:$8 sps:$4 sm:$0xff]   ;;  %v337_v51 = vld [vmem:[%s2102_s28] sm:$0xff] }
  0x85   : > { %s2142_s6 = scalar_lea.vmem [#allocation6], %s1266_s20  ;;  %v1603_v22 = vld [vmem:[%s2087_s11 + $0x94] ss:$8 sps:$4 sm:$0xff]   ;;  %v1606_v24 = vld [vmem:[%s2087_s11 + $0x90] ss:$8 sps:$4 sm:$0xff]   ;;  %v353_v53 = vld [vmem:[%s2102_s28 + $0x80] sm:$0xff] }
  0x86   : > { %v1579_v3 = vld [vmem:[%s2142_s6 + $0x40] sm:$0xff]   ;;  %v1581_v5 = vld [vmem:[%s2142_s6 + $0x48] sm:$0xff]   ;;  %v1583_v7 = vld [vmem:[%s2142_s6 + $0x50] sm:$0xff]  }
  0x87   : > { %v1580_v4 = vld [vmem:[%s2142_s6] sm:$0xff]   ;;  %1325 = vmatprep.subr.bf16.mxu0 %v1579_v3  ;;  %1437 = vmatprep.subr.bf16.mxu1 %v1579_v3  ;;  %v1582_v6 = vld [vmem:[%s2142_s6 + $0x8] sm:$0xff]   ;;  %v1584_v8 = vld [vmem:[%s2142_s6 + $0x10] sm:$0xff]  }
  0x88   : > { %1326 = vmatpush3.bf16.msra.mxu0 %v1580_v4  ;;  %1445 = vmatpush3.bf16.msra.mxu1 %v1580_v4  ;;  %v1585_v9 = vld [vmem:[%s2142_s6 + $0x58] sm:$0xff]   ;;  %v1587_v11 = vld [vmem:[%s2142_s6 + $0x60] sm:$0xff]   ;;  %v1589_v13 = vld [vmem:[%s2142_s6 + $0x68] sm:$0xff]  }
  0x89   : > { %1327 = vmatprep.subr.bf16.mxu0 %v1581_v5  ;;  %1438 = vmatprep.subr.bf16.mxu1 %v1581_v5  ;;  %v1586_v10 = vld [vmem:[%s2142_s6 + $0x18] sm:$0xff]   ;;  %v1588_v12 = vld [vmem:[%s2142_s6 + $0x20] sm:$0xff]   ;;  %v1590_v14 = vld [vmem:[%s2142_s6 + $0x28] sm:$0xff]  }
  0x8a   : > { %v1591_v15 = vld [vmem:[%s2142_s6 + $0x70] sm:$0xff]   ;;  %v1593_v17 = vld [vmem:[%s2142_s6 + $0x78] sm:$0xff]   ;;  %v1607_v25 = vld [vmem:[%s2087_s11 + $0x24] ss:$8 sps:$4 sm:$0xff]  }
  0x8b   : > { %v1592_v16 = vld [vmem:[%s2142_s6 + $0x30] sm:$0xff]   ;;  %v1594_v18 = vld [vmem:[%s2142_s6 + $0x38] sm:$0xff]   ;;  %v1609_v26 = vld [vmem:[%s2087_s11 + $0xa4] ss:$8 sps:$4 sm:$0xff]  }
  0x8c   : > { %1328 = vmatpush3.bf16.msra.mxu0 %v1582_v6  ;;  %1446 = vmatpush3.bf16.msra.mxu1 %v1582_v6  ;;  %v1611_v27 = vld [vmem:[%s2087_s11 + $0x20] ss:$8 sps:$4 sm:$0xff]   ;;  %v1613_v29 = vld [vmem:[%s2087_s11 + $0x34] ss:$8 sps:$4 sm:$0xff]   ;;  %v1617_v31 = vld [vmem:[%s2087_s11 + $0x30] ss:$8 sps:$4 sm:$0xff]  }
  0x8d   : > { %1329 = vmatprep.subr.bf16.mxu0 %v1583_v7  ;;  %1439 = vmatprep.subr.bf16.mxu1 %v1583_v7  ;;  %v1612_v28 = vld [vmem:[%s2087_s11 + $0xa0] ss:$8 sps:$4 sm:$0xff]   ;;  %v1615_v30 = vld [vmem:[%s2087_s11 + $0xb4] ss:$8 sps:$4 sm:$0xff]   ;;  %v1618_v32 = vld [vmem:[%s2087_s11 + $0xb0] ss:$8 sps:$4 sm:$0xff]  }
  0x8e   : > { %v1619_v33 = vld [vmem:[%s2087_s11 + $0x44] ss:$8 sps:$4 sm:$0xff]   ;;  %v1623_v35 = vld [vmem:[%s2087_s11 + $0x40] ss:$8 sps:$4 sm:$0xff]   ;;  %v1625_v37 = vld [vmem:[%s2087_s11 + $0x54] ss:$8 sps:$4 sm:$0xff]  }
  0x8f   : > { %v1621_v34 = vld [vmem:[%s2087_s11 + $0xc4] ss:$8 sps:$4 sm:$0xff]   ;;  %v1624_v36 = vld [vmem:[%s2087_s11 + $0xc0] ss:$8 sps:$4 sm:$0xff]   ;;  %v1627_v38 = vld [vmem:[%s2087_s11 + $0xd4] ss:$8 sps:$4 sm:$0xff]  }
  0x90   : > { %1330 = vmatpush3.bf16.msra.mxu0 %v1584_v8  ;;  %1447 = vmatpush3.bf16.msra.mxu1 %v1584_v8  ;;  %v1629_v39 = vld [vmem:[%s2087_s11 + $0x50] ss:$8 sps:$4 sm:$0xff]   ;;  %v1631_v41 = vld [vmem:[%s2087_s11 + $0x64] ss:$8 sps:$4 sm:$0xff]   ;;  %v1635_v43 = vld [vmem:[%s2087_s11 + $0x60] ss:$8 sps:$4 sm:$0xff]  }
  0x91   : > { %1331 = vmatprep.subr.bf16.mxu0 %v1585_v9  ;;  %1440 = vmatprep.subr.bf16.mxu1 %v1585_v9  ;;  %v1630_v40 = vld [vmem:[%s2087_s11 + $0xd0] ss:$8 sps:$4 sm:$0xff]   ;;  %v1633_v42 = vld [vmem:[%s2087_s11 + $0xe4] ss:$8 sps:$4 sm:$0xff]   ;;  %v1636_v44 = vld [vmem:[%s2087_s11 + $0xe0] ss:$8 sps:$4 sm:$0xff]  }
  0x92   : > { %v1637_v45 = vld [vmem:[%s2087_s11 + $0x74] ss:$8 sps:$4 sm:$0xff]   ;;  %v1641_v47 = vld [vmem:[%s2087_s11 + $0x70] ss:$8 sps:$4 sm:$0xff]   ;;  %v338_v59 = vld [vmem:[%s2102_s28 + $0x8] sm:$0xff] }
  0x93   : > { %v1639_v46 = vld [vmem:[%s2087_s11 + $0xf4] ss:$8 sps:$4 sm:$0xff]   ;;  %v1642_v48 = vld [vmem:[%s2087_s11 + $0xf0] ss:$8 sps:$4 sm:$0xff]   ;;  %v354_v61 = vld [vmem:[%s2102_s28 + $0x88] sm:$0xff] }
  0x94   : > { %1332 = vmatpush3.bf16.msra.mxu0 %v1586_v10  ;;  %1448 = vmatpush3.bf16.msra.mxu1 %v1586_v10  ;;  %v339_v7 = vld [vmem:[%s2102_s28 + $0x10] sm:$0xff] }
  0x95   : > { %1333 = vmatprep.subr.bf16.mxu0 %v1587_v11  ;;  %1441 = vmatprep.subr.bf16.mxu1 %v1587_v11  ;;  %v355_v9 = vld [vmem:[%s2102_s28 + $0x90] sm:$0xff] }
  0x98   : > { %1334 = vmatpush3.bf16.msra.mxu0 %v1588_v12  ;;  %1449 = vmatpush3.bf16.msra.mxu1 %v1588_v12 }
  0x99   : > { %1335 = vmatprep.subr.bf16.mxu0 %v1589_v13  ;;  %1442 = vmatprep.subr.bf16.mxu1 %v1589_v13 }
  0x9c   : > { %1336 = vmatpush3.bf16.msra.mxu0 %v1590_v14  ;;  %1450 = vmatpush3.bf16.msra.mxu1 %v1590_v14 }
  0x9d   : > { %1337 = vmatprep.subr.bf16.mxu0 %v1591_v15  ;;  %1443 = vmatprep.subr.bf16.mxu1 %v1591_v15  ;;  %v340_v15 = vld [vmem:[%s2102_s28 + $0x18] sm:$0xff] }
  0xa0   : > { %1338 = vmatpush3.bf16.msra.mxu0 %v1592_v16  ;;  %1451 = vmatpush3.bf16.msra.mxu1 %v1592_v16 }
  0xa1   : > { %1339 = vmatprep.subr.bf16.mxu0 %v1593_v17  ;;  %1444 = vmatprep.subr.bf16.mxu1 %v1593_v17  ;;  %v356_v17 = vld [vmem:[%s2102_s28 + $0x98] sm:$0xff] }
  0xa4   : > { %1340 = vmatpush3.bf16.msra.mxu0 %v1594_v18  ;;  %1452 = vmatpush3.bf16.msra.mxu1 %v1594_v18 }
  0xa7   : > { %690 = vmatmul.mubr.bf16.vlgmr.msra.gmra.mrb[0].mxu0 %v1595_v19  ;;  %754 = vmatmul.mubr.bf16.vlgmr.msra.gmra.mrb[0].mxu1 %v1598_v20 }
  0xa8   : > { %697 = vmatprep.mubr.bf16.mxu0 %v1601_v21  ;;  %761 = vmatprep.mubr.bf16.mxu1 %v1603_v22 }
  0xaf   : > { %698 = vmatmul.mubr.bf16.gmra.mrb[4].mxu0 %v1605_v23  ;;  %762 = vmatmul.mubr.bf16.gmra.mrb[4].mxu1 %v1606_v24 }
  0xb0   : > { %705 = vmatprep.mubr.bf16.mxu0 %v1607_v25  ;;  %769 = vmatprep.mubr.bf16.mxu1 %v1609_v26 }
  0xb7   : > { %706 = vmatmul.mubr.bf16.gmra.mrb[8].mxu0 %v1611_v27  ;;  %770 = vmatmul.mubr.bf16.gmra.mrb[8].mxu1 %v1612_v28  ;;  %v341_v27 = vld [vmem:[%s2102_s28 + $0x20] sm:$0xff] }
  0xb8   : > { %713 = vmatprep.mubr.bf16.mxu0 %v1613_v29  ;;  %777 = vmatprep.mubr.bf16.mxu1 %v1615_v30  ;;  %v357_v29 = vld [vmem:[%s2102_s28 + $0xa0] sm:$0xff] }
  0xbf   : > { %714 = vmatmul.mubr.bf16.gmra.mrb[12].mxu0 %v1617_v31  ;;  %778 = vmatmul.mubr.bf16.gmra.mrb[12].mxu1 %v1618_v32 }
  0xc0   : > { %721 = vmatprep.mubr.bf16.mxu0 %v1619_v33  ;;  %785 = vmatprep.mubr.bf16.mxu1 %v1621_v34 }
  0xc7   : > { %722 = vmatmul.mubr.bf16.gmra.mrb[16].mxu0 %v1623_v35  ;;  %786 = vmatmul.mubr.bf16.gmra.mrb[16].mxu1 %v1624_v36  ;;  %v342_v35 = vld [vmem:[%s2102_s28 + $0x28] sm:$0xff] }
  0xc8   : > { %729 = vmatprep.mubr.bf16.mxu0 %v1625_v37  ;;  %793 = vmatprep.mubr.bf16.mxu1 %v1627_v38  ;;  %v358_v37 = vld [vmem:[%s2102_s28 + $0xa8] sm:$0xff] }
  0xcf   : > { %730 = vmatmul.mubr.bf16.gmra.mrb[20].mxu0 %v1629_v39  ;;  %794 = vmatmul.mubr.bf16.gmra.mrb[20].mxu1 %v1630_v40 }
  0xd0   : > { %737 = vmatprep.mubr.bf16.mxu0 %v1631_v41  ;;  %801 = vmatprep.mubr.bf16.mxu1 %v1633_v42 }
  0xd7   : > { %738 = vmatmul.mubr.bf16.gmra.mrb[24].mxu0 %v1635_v43  ;;  %802 = vmatmul.mubr.bf16.gmra.mrb[24].mxu1 %v1636_v44 }
  0xd8   : > { %745 = vmatprep.mubr.bf16.mxu0 %v1637_v45  ;;  %809 = vmatprep.mubr.bf16.mxu1 %v1639_v46 }
  0xdf   : > { %746 = vmatmul.mubr.bf16.gmra.mrb[28].mxu0 %v1641_v47  ;;  %810 = vmatmul.mubr.bf16.gmra.mrb[28].mxu1 %v1642_v48  ;;  %v343_v47 = vld [vmem:[%s2102_s28 + $0x30] sm:$0xff] }
 0x17a   : > { %v1341_v49 = vpop.f32.mrb[0].mxu0  ;;  %v1389_v50 = vpop.f32.mrb[0].mxu1 }
 0x17b   : > { %v1342_v52 = vpop.f32.mrb[1].mxu0  ;;  %v1390_v54 = vpop.f32.mrb[1].mxu1 }
 0x17c   : > { %v1343_v55 = vadd.f32 %v1342_v52, %v1341_v49  ;;  %v1391_v56 = vadd.f32 %v1390_v54, %v1389_v50  ;;  %v1344_v57 = vpop.f32.mrb[2].mxu0  ;;  %v1392_v58 = vpop.f32.mrb[2].mxu1  ;;  %v359_v49 = vld [vmem:[%s2102_s28 + $0xb0] sm:$0xff] }
 0x17d   : > { %v1345_v60 = vpop.f32.mrb[3].mxu0  ;;  %v1393_v62 = vpop.f32.mrb[3].mxu1 }
 0x17e   : > { %v818_v63 = vadd.f32 %v1343_v55, %v337_v51  ;;  %v834_v0 = vadd.f32 %v1391_v56, %v353_v53  ;;  %v1346_v1 = vadd.f32 %v1345_v60, %v1344_v57  ;;  %v1394_v2 = vadd.f32 %v1393_v62, %v1392_v58  ;;  %v344_v55 = vld [vmem:[%s2102_s28 + $0x38] sm:$0xff] }
 0x17f   : > { %v360_v57 = vld [vmem:[%s2102_s28 + $0xb8] sm:$0xff] }
 0x180   : > { %850 = vst [vmem:[%s2102_s28] sm:$0xff] %v818_v63  ;;  %866 = vst [vmem:[%s2102_s28 + $0x80] sm:$0xff] %v834_v0  ;;  %v819_v3 = vadd.f32 %v1346_v1, %v338_v59  ;;  %v835_v4 = vadd.f32 %v1394_v2, %v354_v61 }
 0x182   : > { %851 = vst [vmem:[%s2102_s28 + $0x8] sm:$0xff] %v819_v3  ;;  %867 = vst [vmem:[%s2102_s28 + $0x88] sm:$0xff] %v835_v4  ;;  %v1347_v5 = vpop.f32.mrb[4].mxu0  ;;  %v1395_v6 = vpop.f32.mrb[4].mxu1  ;;  %v345_v3 = vld [vmem:[%s2102_s28 + $0x40] sm:$0xff] }
 0x183   : > { %v1348_v8 = vpop.f32.mrb[5].mxu0  ;;  %v1396_v10 = vpop.f32.mrb[5].mxu1 }
 0x184   : > { %v1349_v11 = vadd.f32 %v1348_v8, %v1347_v5  ;;  %v1397_v12 = vadd.f32 %v1396_v10, %v1395_v6  ;;  %v1350_v13 = vpop.f32.mrb[6].mxu0  ;;  %v1398_v14 = vpop.f32.mrb[6].mxu1  ;;  %v361_v5 = vld [vmem:[%s2102_s28 + $0xc0] sm:$0xff] }
 0x185   : > { %v1351_v16 = vpop.f32.mrb[7].mxu0  ;;  %v1399_v18 = vpop.f32.mrb[7].mxu1 }
 0x186   : > { %v820_v19 = vadd.f32 %v1349_v11, %v339_v7  ;;  %v836_v20 = vadd.f32 %v1397_v12, %v355_v9  ;;  %v1352_v21 = vadd.f32 %v1351_v16, %v1350_v13  ;;  %v1400_v22 = vadd.f32 %v1399_v18, %v1398_v14  ;;  %v346_v11 = vld [vmem:[%s2102_s28 + $0x48] sm:$0xff] }
 0x187   : > { %v362_v13 = vld [vmem:[%s2102_s28 + $0xc8] sm:$0xff] }
 0x188   : > { %852 = vst [vmem:[%s2102_s28 + $0x10] sm:$0xff] %v820_v19  ;;  %868 = vst [vmem:[%s2102_s28 + $0x90] sm:$0xff] %v836_v20  ;;  %v821_v23 = vadd.f32 %v1352_v21, %v340_v15  ;;  %v837_v24 = vadd.f32 %v1400_v22, %v356_v17 }
 0x18a   : > { %853 = vst [vmem:[%s2102_s28 + $0x18] sm:$0xff] %v821_v23  ;;  %869 = vst [vmem:[%s2102_s28 + $0x98] sm:$0xff] %v837_v24  ;;  %v1353_v25 = vpop.f32.mrb[8].mxu0  ;;  %v1401_v26 = vpop.f32.mrb[8].mxu1  ;;  %v347_v23 = vld [vmem:[%s2102_s28 + $0x50] sm:$0xff] }
 0x18b   : > { %v1354_v28 = vpop.f32.mrb[9].mxu0  ;;  %v1402_v30 = vpop.f32.mrb[9].mxu1 }
 0x18c   : > { %v1355_v31 = vadd.f32 %v1354_v28, %v1353_v25  ;;  %v1403_v32 = vadd.f32 %v1402_v30, %v1401_v26  ;;  %v1356_v33 = vpop.f32.mrb[10].mxu0  ;;  %v1404_v34 = vpop.f32.mrb[10].mxu1  ;;  %v363_v25 = vld [vmem:[%s2102_s28 + $0xd0] sm:$0xff] }
 0x18d   : > { %v1357_v36 = vpop.f32.mrb[11].mxu0  ;;  %v1405_v38 = vpop.f32.mrb[11].mxu1 }
 0x18e   : > { %v822_v39 = vadd.f32 %v1355_v31, %v341_v27  ;;  %v838_v40 = vadd.f32 %v1403_v32, %v357_v29  ;;  %v1358_v41 = vadd.f32 %v1357_v36, %v1356_v33  ;;  %v1406_v42 = vadd.f32 %v1405_v38, %v1404_v34  ;;  %v348_v31 = vld [vmem:[%s2102_s28 + $0x58] sm:$0xff] }
 0x18f   : > { %v364_v33 = vld [vmem:[%s2102_s28 + $0xd8] sm:$0xff] }
 0x190   : > { %854 = vst [vmem:[%s2102_s28 + $0x20] sm:$0xff] %v822_v39  ;;  %870 = vst [vmem:[%s2102_s28 + $0xa0] sm:$0xff] %v838_v40  ;;  %v823_v43 = vadd.f32 %v1358_v41, %v342_v35  ;;  %v839_v44 = vadd.f32 %v1406_v42, %v358_v37 }
 0x192   : > { %855 = vst [vmem:[%s2102_s28 + $0x28] sm:$0xff] %v823_v43  ;;  %871 = vst [vmem:[%s2102_s28 + $0xa8] sm:$0xff] %v839_v44  ;;  %v1359_v45 = vpop.f32.mrb[12].mxu0  ;;  %v1407_v46 = vpop.f32.mrb[12].mxu1  ;;  %v349_v43 = vld [vmem:[%s2102_s28 + $0x60] sm:$0xff] }
 0x193   : > { %v1360_v48 = vpop.f32.mrb[13].mxu0  ;;  %v1408_v50 = vpop.f32.mrb[13].mxu1 }
 0x194   : > { %v1361_v51 = vadd.f32 %v1360_v48, %v1359_v45  ;;  %v1409_v52 = vadd.f32 %v1408_v50, %v1407_v46  ;;  %v1362_v53 = vpop.f32.mrb[14].mxu0  ;;  %v1410_v54 = vpop.f32.mrb[14].mxu1  ;;  %v365_v45 = vld [vmem:[%s2102_s28 + $0xe0] sm:$0xff] }
 0x195   : > { %v1363_v56 = vpop.f32.mrb[15].mxu0  ;;  %v1411_v58 = vpop.f32.mrb[15].mxu1 }
 0x196   : > { %v824_v59 = vadd.f32 %v1361_v51, %v343_v47  ;;  %v840_v60 = vadd.f32 %v1409_v52, %v359_v49  ;;  %v1364_v61 = vadd.f32 %v1363_v56, %v1362_v53  ;;  %v1412_v62 = vadd.f32 %v1411_v58, %v1410_v54  ;;  %v350_v51 = vld [vmem:[%s2102_s28 + $0x68] sm:$0xff] }
 0x197   : > { %v366_v53 = vld [vmem:[%s2102_s28 + $0xe8] sm:$0xff] }
 0x198   : > { %856 = vst [vmem:[%s2102_s28 + $0x30] sm:$0xff] %v824_v59  ;;  %872 = vst [vmem:[%s2102_s28 + $0xb0] sm:$0xff] %v840_v60  ;;  %v825_v63 = vadd.f32 %v1364_v61, %v344_v55  ;;  %v841_v0 = vadd.f32 %v1412_v62, %v360_v57 }
 0x19a   : > { %857 = vst [vmem:[%s2102_s28 + $0x38] sm:$0xff] %v825_v63  ;;  %873 = vst [vmem:[%s2102_s28 + $0xb8] sm:$0xff] %v841_v0  ;;  %v1365_v1 = vpop.f32.mrb[16].mxu0  ;;  %v1413_v2 = vpop.f32.mrb[16].mxu1  ;;  %v351_v63 = vld [vmem:[%s2102_s28 + $0x70] sm:$0xff] }
 0x19b   : > { %v1366_v4 = vpop.f32.mrb[17].mxu0  ;;  %v1414_v6 = vpop.f32.mrb[17].mxu1 }
 0x19c   : > { %v1367_v7 = vadd.f32 %v1366_v4, %v1365_v1  ;;  %v1415_v8 = vadd.f32 %v1414_v6, %v1413_v2  ;;  %v1368_v9 = vpop.f32.mrb[18].mxu0  ;;  %v1416_v10 = vpop.f32.mrb[18].mxu1  ;;  %v367_v1 = vld [vmem:[%s2102_s28 + $0xf0] sm:$0xff] }
 0x19d   : > { %v1369_v12 = vpop.f32.mrb[19].mxu0  ;;  %v1417_v14 = vpop.f32.mrb[19].mxu1 }
 0x19e   : > { %v826_v15 = vadd.f32 %v1367_v7, %v345_v3  ;;  %v842_v16 = vadd.f32 %v1415_v8, %v361_v5  ;;  %v1370_v17 = vadd.f32 %v1369_v12, %v1368_v9  ;;  %v1418_v18 = vadd.f32 %v1417_v14, %v1416_v10  ;;  %v352_v7 = vld [vmem:[%s2102_s28 + $0x78] sm:$0xff] }
 0x19f   : > { %v368_v9 = vld [vmem:[%s2102_s28 + $0xf8] sm:$0xff] }
 0x1a0   : > { %858 = vst [vmem:[%s2102_s28 + $0x40] sm:$0xff] %v826_v15  ;;  %874 = vst [vmem:[%s2102_s28 + $0xc0] sm:$0xff] %v842_v16  ;;  %v827_v19 = vadd.f32 %v1370_v17, %v346_v11  ;;  %v843_v20 = vadd.f32 %v1418_v18, %v362_v13  ;;  %v887_v17 = vld [vmem:[%s2102_s28] sm:$0xff] (!%p1315_p4)  ;;  %v888_v18 = vld [vmem:[%s2102_s28 + $0x8] sm:$0xff] (!%p1315_p4) }
 0x1a1   : > { %vm919_vm0 = vcmp.gt.f32.partialorder (!%p1315_p4), %v887_v17, 0.0  ;;  %vm920_vm1 = vcmp.gt.f32.partialorder (!%p1315_p4), %v888_v18, 0.0 }
 0x1a2   : > { %859 = vst [vmem:[%s2102_s28 + $0x48] sm:$0xff] %v827_v19  ;;  %875 = vst [vmem:[%s2102_s28 + $0xc8] sm:$0xff] %v843_v20  ;;  %v1371_v21 = vpop.f32.mrb[20].mxu0  ;;  %v1419_v22 = vpop.f32.mrb[20].mxu1  ;;  %v889_v19 = vld [vmem:[%s2102_s28 + $0x10] sm:$0xff] (!%p1315_p4)  ;;  %v890_v20 = vld [vmem:[%s2102_s28 + $0x18] sm:$0xff] (!%p1315_p4) }
 0x1a3   : > { %v1372_v24 = vpop.f32.mrb[21].mxu0  ;;  %v1420_v26 = vpop.f32.mrb[21].mxu1  ;;  %vm921_vm2 = vcmp.gt.f32.partialorder (!%p1315_p4), %v889_v19, 0.0  ;;  %vm922_vm3 = vcmp.gt.f32.partialorder (!%p1315_p4), %v890_v20, 0.0 }
 0x1a4   : > { %v1373_v27 = vadd.f32 %v1372_v24, %v1371_v21  ;;  %v1421_v28 = vadd.f32 %v1420_v26, %v1419_v22  ;;  %v1374_v29 = vpop.f32.mrb[22].mxu0  ;;  %v1422_v30 = vpop.f32.mrb[22].mxu1  ;;  %v891_v21 = vld [vmem:[%s2102_s28 + $0x20] sm:$0xff] (!%p1315_p4)  ;;  %v892_v22 = vld [vmem:[%s2102_s28 + $0x28] sm:$0xff] (!%p1315_p4)  ;;  %v894_v24 = vld [vmem:[%s2102_s28 + $0x38] sm:$0xff] (!%p1315_p4) }
 0x1a5   : > { %v1375_v32 = vpop.f32.mrb[23].mxu0  ;;  %v1423_v34 = vpop.f32.mrb[23].mxu1  ;;  %vm923_vm4 = vcmp.gt.f32.partialorder (!%p1315_p4), %v891_v21, 0.0  ;;  %vm924_vm5 = vcmp.gt.f32.partialorder (!%p1315_p4), %v892_v22, 0.0  ;;  %vm926_vm7 = vcmp.gt.f32.partialorder (!%p1315_p4), %v894_v24, 0.0 }
 0x1a6   : > { %v828_v35 = vadd.f32 %v1373_v27, %v347_v23  ;;  %v844_v36 = vadd.f32 %v1421_v28, %v363_v25  ;;  %v1376_v37 = vadd.f32 %v1375_v32, %v1374_v29  ;;  %v1424_v38 = vadd.f32 %v1423_v34, %v1422_v30  ;;  %v893_v23 = vld [vmem:[%s2102_s28 + $0x30] sm:$0xff] (!%p1315_p4)  ;;  %v2279_v34 = vld [vmem:[%s2102_s28 + $0x88] sm:$0xff] (!%p1315_p4) }
 0x1a7   : > { %v895_v25 = vld [vmem:[%s2102_s28 + $0x40] sm:$0xff] (!%p1315_p4)  ;;  %vm925_vm6 = vcmp.gt.f32.partialorder (!%p1315_p4), %v893_v23, 0.0  ;;  %vm936_vm10 = vcmp.gt.f32.partialorder (!%p1315_p4), %v2279_v34, 0.0 }
 0x1a8   : > { %860 = vst [vmem:[%s2102_s28 + $0x50] sm:$0xff] %v828_v35  ;;  %876 = vst [vmem:[%s2102_s28 + $0xd0] sm:$0xff] %v844_v36  ;;  %v829_v39 = vadd.f32 %v1376_v37, %v348_v31  ;;  %v845_v40 = vadd.f32 %v1424_v38, %v364_v33  ;;  %vm927_vm8 = vcmp.gt.f32.partialorder (!%p1315_p4), %v895_v25, 0.0  ;;  %v2276_v33 = vld [vmem:[%s2102_s28 + $0x80] sm:$0xff] (!%p1315_p4)  ;;  %v2282_v35 = vstv (!%p1315_p4), %s2255_s9 }
 0x1a9   : > { %v896_v26 = vld [vmem:[%s2102_s28 + $0x48] sm:$0xff] (!%p1315_p4)  ;;  %vm935_vm11 = vcmp.gt.f32.partialorder (!%p1315_p4), %v2276_v33, 0.0  ;;  %v952_v36 = vmul.f32 (!%p1315_p4), %v2282_v35, %v887_v17  ;;  %v953_v37 = vmul.f32 (!%p1315_p4), %v2282_v35, %v888_v18  ;;  %v954_v38 = vmul.f32 (!%p1315_p4), %v2282_v35, %v889_v19 }
 0x1aa   : > { %861 = vst [vmem:[%s2102_s28 + $0x58] sm:$0xff] %v829_v39  ;;  %877 = vst [vmem:[%s2102_s28 + $0xd8] sm:$0xff] %v845_v40  ;;  %v1377_v41 = vpop.f32.mrb[24].mxu0  ;;  %v1425_v42 = vpop.f32.mrb[24].mxu1  ;;  %vm928_vm9 = vcmp.gt.f32.partialorder (!%p1315_p4), %v896_v26, 0.0  ;;  %v955_v39 = vmul.f32 (!%p1315_p4), %v2282_v35, %v890_v20  ;;  %v956_v40 = vmul.f32 (!%p1315_p4), %v2282_v35, %v891_v21 }
 0x1ab   : > { %v1378_v44 = vpop.f32.mrb[25].mxu0  ;;  %v1426_v46 = vpop.f32.mrb[25].mxu1 }
 0x1ac   : > { %v1379_v47 = vadd.f32 %v1378_v44, %v1377_v41  ;;  %v1427_v48 = vadd.f32 %v1426_v46, %v1425_v42  ;;  %v1380_v49 = vpop.f32.mrb[26].mxu0  ;;  %v1428_v50 = vpop.f32.mrb[26].mxu1  ;;  %v957_v41 = vmul.f32 (!%p1315_p4), %v2282_v35, %v892_v22  ;;  %v958_v42 = vmul.f32 (!%p1315_p4), %v2282_v35, %v893_v23 }
 0x1ad   : > { %v1381_v52 = vpop.f32.mrb[27].mxu0  ;;  %v1429_v54 = vpop.f32.mrb[27].mxu1  ;;  %v984_v44 = vsel (!%p1315_p4), %vm919_vm0, %v887_v17, %v952_v36  ;;  %v986_v46 = vsel (!%p1315_p4), %vm921_vm2, %v889_v19, %v954_v38  ;;  %v910_v19 = vld [vmem:[%s2102_s28 + $0xb8] sm:$0xff] (!%p1315_p4) }
 0x1ae   : > { %v830_v55 = vadd.f32 %v1379_v47, %v349_v43  ;;  %v846_v56 = vadd.f32 %v1427_v48, %v365_v45  ;;  %v1382_v57 = vadd.f32 %v1381_v52, %v1380_v49  ;;  %v1430_v58 = vadd.f32 %v1429_v54, %v1428_v50  ;;  %1016 = vst [vmem:[%s2102_s28] sm:$0xff] (!%p1315_p4), %v984_v44 }
 0x1af   : > { %v897_v27 = vld [vmem:[%s2102_s28 + $0x50] sm:$0xff] (!%p1315_p4)  ;;  %v959_v43 = vmul.f32 (!%p1315_p4), %v2282_v35, %v894_v24  ;;  %v985_v45 = vsel (!%p1315_p4), %vm920_vm1, %v888_v18, %v953_v37  ;;  %v987_v47 = vsel (!%p1315_p4), %vm922_vm3, %v890_v20, %v955_v39  ;;  %1018 = vst [vmem:[%s2102_s28 + $0x10] sm:$0xff] (!%p1315_p4), %v986_v46  ;;  %v988_v49 = vsel (!%p1315_p4), %vm923_vm4, %v891_v21, %v956_v40 }
 0x1b0   : > { %862 = vst [vmem:[%s2102_s28 + $0x60] sm:$0xff] %v830_v55  ;;  %878 = vst [vmem:[%s2102_s28 + $0xe0] sm:$0xff] %v846_v56  ;;  %v831_v59 = vadd.f32 %v1382_v57, %v350_v51  ;;  %v847_v60 = vadd.f32 %v1430_v58, %v366_v53  ;;  %v1048_v48 = vadd.f32 (!%p1315_p4), %v985_v45, %v984_v44  ;;  %vm2580_vm0 = vcmp.gt.f32.partialorder (!%p1315_p4), %v897_v27, 0.0 }
 0x1b1   : > { %v898_v28 = vld [vmem:[%s2102_s28 + $0x58] sm:$0xff] (!%p1315_p4)  ;;  %1017 = vst [vmem:[%s2102_s28 + $0x8] sm:$0xff] (!%p1315_p4), %v985_v45  ;;  %1019 = vst [vmem:[%s2102_s28 + $0x18] sm:$0xff] (!%p1315_p4), %v987_v47  ;;  %v989_v50 = vsel (!%p1315_p4), %vm924_vm5, %v892_v22, %v957_v41  ;;  %v990_v51 = vsel (!%p1315_p4), %vm925_vm6, %v893_v23, %v958_v42  ;;  %v2310_v52 = vsel (!%p1315_p4), %vm926_vm7, %v894_v24, %v959_v43  ;;  %v911_v23 = vld [vmem:[%s2102_s28 + $0xc0] sm:$0xff] (!%p1315_p4)  ;;  %vm942_vm7 = vcmp.gt.f32.partialorder (!%p1315_p4), %v910_v19, 0.0 }
 0x1b2   : > { %863 = vst [vmem:[%s2102_s28 + $0x68] sm:$0xff] %v831_v59  ;;  %879 = vst [vmem:[%s2102_s28 + $0xe8] sm:$0xff] %v847_v60  ;;  %v1383_v61 = vpop.f32.mrb[28].mxu0  ;;  %v1431_v62 = vpop.f32.mrb[28].mxu1  ;;  %v960_v53 = vmul.f32 (!%p1315_p4), %v2282_v35, %v895_v25  ;;  %v961_v54 = vmul.f32 (!%p1315_p4), %v2282_v35, %v896_v26  ;;  %v962_v55 = vmul.f32 (!%p1315_p4), %v2282_v35, %v897_v27  ;;  %vm2581_vm1 = vcmp.gt.f32.partialorder (!%p1315_p4), %v898_v28, 0.0 }
 0x1b3   : > { %v1384_v0 = vpop.f32.mrb[29].mxu0  ;;  %v1432_v2 = vpop.f32.mrb[29].mxu1  ;;  %1020 = vst [vmem:[%s2102_s28 + $0x20] sm:$0xff] (!%p1315_p4), %v988_v49  ;;  %1021 = vst [vmem:[%s2102_s28 + $0x28] sm:$0xff] (!%p1315_p4), %v989_v50  ;;  %v1049_v56 = vadd.f32 (!%p1315_p4), %v1048_v48, %v986_v46  ;;  %v963_v57 = vmul.f32 (!%p1315_p4), %v2282_v35, %v898_v28 }
 0x1b4   : > { %v1385_v3 = vadd.f32 %v1384_v0, %v1383_v61  ;;  %v1433_v4 = vadd.f32 %v1432_v2, %v1431_v62  ;;  %v1386_v5 = vpop.f32.mrb[30].mxu0  ;;  %v1434_v6 = vpop.f32.mrb[30].mxu1  ;;  %885 = sbr.rel (%p1315_p4) target bundleno = 511 (0x1ff), region = 48  ;;  %1022 = vst [vmem:[%s2102_s28 + $0x30] sm:$0xff] (!%p1315_p4), %v990_v51  ;;  %1023 = vst [vmem:[%s2102_s28 + $0x38] sm:$0xff] (!%p1315_p4), %v2310_v52  ;;  %v2321_v60 = vsel (!%p1315_p4), %vm927_vm8, %v895_v25, %v960_v53  ;;  %v905_v0 = vld [vmem:[%s2102_s28 + $0x90] sm:$0xff] (!%p1315_p4) }
 0x1b5   : > { %v1387_v8 = vpop.f32.mrb[31].mxu0  ;;  %v1435_v10 = vpop.f32.mrb[31].mxu1  ;;  %v2324_v61 = vsel (!%p1315_p4), %vm928_vm9, %v896_v26, %v961_v54  ;;  %v2327_v62 = vsel (!%p1315_p4), %vm2580_vm0, %v897_v27, %v962_v55  ;;  %v1050_v2 = vadd.f32 (!%p1315_p4), %v1049_v56, %v987_v47  ;;  %1024 = vst [vmem:[%s2102_s28 + $0x40] sm:$0xff] (!%p1315_p4), %v2321_v60  ;;  %vm937_vm2 = vcmp.gt.f32.partialorder (!%p1315_p4), %v905_v0, 0.0  ;;  %v912_v26 = vld [vmem:[%s2102_s28 + $0xc8] sm:$0xff] (!%p1315_p4) }
 0x1b6   : > { %v832_v11 = vadd.f32 %v1385_v3, %v351_v63  ;;  %v848_v12 = vadd.f32 %v1433_v4, %v367_v1  ;;  %v1388_v13 = vadd.f32 %v1387_v8, %v1386_v5  ;;  %v1436_v14 = vadd.f32 %v1435_v10, %v1434_v6  ;;  %v906_v1 = vld [vmem:[%s2102_s28 + $0x98] sm:$0xff] (!%p1315_p4)  ;;  %1025 = vst [vmem:[%s2102_s28 + $0x48] sm:$0xff] (!%p1315_p4), %v2324_v61  ;;  %v907_v10 = vld [vmem:[%s2102_s28 + $0xa0] sm:$0xff] (!%p1315_p4) }
 0x1b7   : > { %v899_v29 = vld [vmem:[%s2102_s28 + $0x60] sm:$0xff] (!%p1315_p4)  ;;  %1026 = vst [vmem:[%s2102_s28 + $0x50] sm:$0xff] (!%p1315_p4), %v2327_v62  ;;  %v2339_v3 = vsel (!%p1315_p4), %vm2581_vm1, %v898_v28, %v963_v57  ;;  %v968_v8 = vmul.f32 (!%p1315_p4), %v2282_v35, %v2276_v33  ;;  %vm938_vm3 = vcmp.gt.f32.partialorder (!%p1315_p4), %v906_v1, 0.0  ;;  %v971_v18 = vmul.f32 (!%p1315_p4), %v2282_v35, %v906_v1 }
 0x1b8   : > { %864 = vst [vmem:[%s2102_s28 + $0x70] sm:$0xff] %v832_v11  ;;  %880 = vst [vmem:[%s2102_s28 + $0xf0] sm:$0xff] %v848_v12  ;;  %v833_v15 = vadd.f32 %v1388_v13, %v352_v7  ;;  %v849_v16 = vadd.f32 %v1436_v14, %v368_v9  ;;  %vm931_vm12 = vcmp.gt.f32.partialorder (!%p1315_p4), %v899_v29, 0.0  ;;  %v964_v58 = vmul.f32 (!%p1315_p4), %v2282_v35, %v899_v29  ;;  %v908_v13 = vld [vmem:[%s2102_s28 + $0xa8] sm:$0xff] (!%p1315_p4)  ;;  %v909_v14 = vld [vmem:[%s2102_s28 + $0xb0] sm:$0xff] (!%p1315_p4) }
 0x1b9   : > { %v900_v30 = vld [vmem:[%s2102_s28 + $0x68] sm:$0xff] (!%p1315_p4)  ;;  %1027 = vst [vmem:[%s2102_s28 + $0x58] sm:$0xff] (!%p1315_p4), %v2339_v3  ;;  %v969_v9 = vmul.f32 (!%p1315_p4), %v2282_v35, %v2279_v34  ;;  %v1051_v11 = vadd.f32 (!%p1315_p4), %v1050_v2, %v988_v49  ;;  %v970_v12 = vmul.f32 (!%p1315_p4), %v2282_v35, %v905_v0  ;;  %vm939_vm4 = vcmp.gt.f32.partialorder (!%p1315_p4), %v907_v10, 0.0  ;;  %v915_v39 = vld [vmem:[%s2102_s28 + $0xe0] sm:$0xff] (!%p1315_p4) }
 0x1ba   : > { %865 = vst [vmem:[%s2102_s28 + $0x78] sm:$0xff] %v833_v15  ;;  %881 = vst [vmem:[%s2102_s28 + $0xf8] sm:$0xff] %v849_v16  ;;  %vm932_vm13 = vcmp.gt.f32.partialorder (!%p1315_p4), %v900_v30, 0.0  ;;  %v965_v59 = vmul.f32 (!%p1315_p4), %v2282_v35, %v900_v30  ;;  %v2342_v4 = vsel (!%p1315_p4), %vm931_vm12, %v899_v29, %v964_v58  ;;  %v2376_v16 = vsel (!%p1315_p4), %vm935_vm11, %v2276_v33, %v968_v8  ;;  %v916_v40 = vld [vmem:[%s2102_s28 + $0xe8] sm:$0xff] (!%p1315_p4) }
 0x1bb   : > { %1028 = vst [vmem:[%s2102_s28 + $0x60] sm:$0xff] %v2342_v4  ;;  %v2381_v17 = vsel %vm936_vm10, %v2279_v34, %v969_v9  ;;  %v1052_v20 = vadd.f32 %v1051_v11, %v989_v50  ;;  %1032 = vst [vmem:[%s2102_s28 + $0x80] sm:$0xff] %v2376_v16  ;;  %v2391_v21 = vsel %vm937_vm2, %v905_v0, %v970_v12  ;;  %vm940_vm5 = vcmp.gt.f32.partialorder %v908_v13, 0.0  ;;  %v914_v34 = vld [vmem:[%s2102_s28 + $0xd8] sm:$0xff] }
 0x1bc   : > { %v2345_v5 = vsel %vm932_vm13, %v900_v30, %v965_v59  ;;  %1033 = vst [vmem:[%s2102_s28 + $0x88] sm:$0xff] %v2381_v17  ;;  %v972_v22 = vmul.f32 %v2282_v35, %v907_v10  ;;  %1034 = vst [vmem:[%s2102_s28 + $0x90] sm:$0xff] %v2391_v21  ;;  %v2398_v24 = vsel %vm938_vm3, %v906_v1, %v971_v18  ;;  %vm941_vm6 = vcmp.gt.f32.partialorder %v909_v14, 0.0  ;;  %v913_v30 = vld [vmem:[%s2102_s28 + $0xd0] sm:$0xff] }
 0x1bd   : > { %1029 = vst [vmem:[%s2102_s28 + $0x68] sm:$0xff] %v2345_v5  ;;  %v973_v25 = vmul.f32 %v2282_v35, %v908_v13  ;;  %v1053_v27 = vadd.f32 %v1052_v20, %v990_v51  ;;  %1035 = vst [vmem:[%s2102_s28 + $0x98] sm:$0xff] %v2398_v24  ;;  %v974_v29 = vmul.f32 %v2282_v35, %v909_v14  ;;  %vm943_vm8 = vcmp.gt.f32.partialorder %v911_v23, 0.0 }
 0x1be   : > { %v1004_v28 = vsel %vm939_vm4, %v907_v10, %v972_v22  ;;  %v976_v33 = vmul.f32 %v2282_v35, %v911_v23  ;;  %vm944_vm9 = vcmp.gt.f32.partialorder %v912_v26, 0.0  ;;  %v977_v38 = vmul.f32 %v2282_v35, %v912_v26 }
 0x1bf   : > { %v901_v31 = vld [vmem:[%s2102_s28 + $0x70] sm:$0xff]  ;;  %1036 = vst [vmem:[%s2102_s28 + $0xa0] sm:$0xff] %v1004_v28  ;;  %v1054_v36 = vadd.f32 %v1053_v27, %v2310_v52  ;;  %v1006_v37 = vsel %vm941_vm6, %v909_v14, %v974_v29  ;;  %vm945_vm10 = vcmp.gt.f32.partialorder %v913_v30, 0.0  ;;  %v978_v43 = vmul.f32 %v2282_v35, %v913_v30 }
 0x1c0   : > { %vm933_vm14 = vcmp.gt.f32.partialorder %v901_v31, 0.0  ;;  %v966_v63 = vmul.f32 %v2282_v35, %v901_v31  ;;  %1038 = vst [vmem:[%s2102_s28 + $0xb0] sm:$0xff] %v1006_v37  ;;  %v1008_v42 = vsel %vm943_vm8, %v911_v23, %v976_v33  ;;  %v917_v44 = vld [vmem:[%s2102_s28 + $0xf0] sm:$0xff]  ;;  %v1009_v46 = vsel %vm944_vm9, %v912_v26, %v977_v38 }
 0x1c1   : > { %v2273_v32 = vld [vmem:[%s2102_s28 + $0x78] sm:$0xff]  ;;  %v1055_v45 = vadd.f32 %v1054_v36, %v2321_v60  ;;  %1040 = vst [vmem:[%s2102_s28 + $0xc0] sm:$0xff] %v1008_v42  ;;  %vm946_vm11 = vcmp.gt.f32.partialorder %v914_v34, 0.0  ;;  %v979_v47 = vmul.f32 %v2282_v35, %v914_v34  ;;  %1041 = vst [vmem:[%s2102_s28 + $0xc8] sm:$0xff] %v1009_v46  ;;  %v1010_v49 = vsel %vm945_vm10, %v913_v30, %v978_v43 }
 0x1c2   : > { %vm934_vm15 = vcmp.gt.f32.partialorder %v2273_v32, 0.0  ;;  %v2354_v6 = vsel %vm933_vm14, %v901_v31, %v966_v63  ;;  %v967_v7 = vmul.f32 %v2282_v35, %v2273_v32  ;;  %v1005_v31 = vsel %vm940_vm5, %v908_v13, %v973_v25  ;;  %v918_v48 = vld [vmem:[%s2102_s28 + $0xf8] sm:$0xff]  ;;  %1042 = vst [vmem:[%s2102_s28 + $0xd0] sm:$0xff] %v1010_v49 }
 0x1c3   : > { %1030 = vst [vmem:[%s2102_s28 + $0x70] sm:$0xff] %v2354_v6  ;;  %1037 = vst [vmem:[%s2102_s28 + $0xa8] sm:$0xff] %v1005_v31  ;;  %vm947_vm12 = vcmp.gt.f32.partialorder %v915_v39, 0.0  ;;  %v980_v50 = vmul.f32 %v2282_v35, %v915_v39  ;;  %vm948_vm13 = vcmp.gt.f32.partialorder %v916_v40, 0.0  ;;  %v1056_v51 = vadd.f32 %v1055_v45, %v2324_v61 }
 0x1c4   : > { %v2371_v15 = vsel %vm934_vm15, %v2273_v32, %v967_v7  ;;  %v975_v32 = vmul.f32 %v2282_v35, %v910_v19  ;;  %v1011_v52 = vsel %vm946_vm11, %v914_v34, %v979_v47  ;;  %v981_v53 = vmul.f32 %v2282_v35, %v916_v40 }
 0x1c5   : > { %1031 = vst [vmem:[%s2102_s28 + $0x78] sm:$0xff] %v2371_v15  ;;  %vm949_vm14 = vcmp.gt.f32.partialorder %v917_v44, 0.0  ;;  %1043 = vst [vmem:[%s2102_s28 + $0xd8] sm:$0xff] %v1011_v52  ;;  %v1012_v54 = vsel %vm947_vm12, %v915_v39, %v980_v50  ;;  %v982_v55 = vmul.f32 %v2282_v35, %v917_v44  ;;  %vm950_vm15 = vcmp.gt.f32.partialorder %v918_v48, 0.0 }
 0x1c6   : > { %v1007_v41 = vsel %vm942_vm7, %v910_v19, %v975_v32  ;;  %v983_v56 = vmul.f32 %v2282_v35, %v918_v48  ;;  %v1057_v57 = vadd.f32 %v1056_v51, %v2327_v62  ;;  %1044 = vst [vmem:[%s2102_s28 + $0xe0] sm:$0xff] %v1012_v54  ;;  %v1013_v58 = vsel %vm948_vm13, %v916_v40, %v981_v53 }
 0x1c7   : > { %1039 = vst [vmem:[%s2102_s28 + $0xb8] sm:$0xff] %v1007_v41  ;;  %1045 = vst [vmem:[%s2102_s28 + $0xe8] sm:$0xff] %v1013_v58  ;;  %v1014_v59 = vsel %vm949_vm14, %v917_v44, %v982_v55 }
 0x1c8   : > { %v1015_v60 = vsel %vm950_vm15, %v918_v48, %v983_v56  ;;  %v1058_v61 = vadd.f32 %v1057_v57, %v2339_v3  ;;  %1046 = vst [vmem:[%s2102_s28 + $0xf0] sm:$0xff] %v1014_v59 }
 0x1c9   : > { %1047 = vst [vmem:[%s2102_s28 + $0xf8] sm:$0xff] %v1015_v60 }
 0x1ca   : > { %v1059_v63 = vadd.f32 %v1058_v61, %v2342_v4 }
 0x1cc   : > { %v1060_v0 = vadd.f32 %v1059_v63, %v2345_v5 }
 0x1ce   : > { %v1061_v1 = vadd.f32 %v1060_v0, %v2354_v6 }
 0x1d0   : > { %v1062_v2 = vadd.f32 %v1061_v1, %v2371_v15 }
 0x1d2   : > { %v1063_v35 = vadd.f32 %v1062_v2, %v2376_v16 }
 0x1d4   : > { %v1064_v62 = vadd.f32 %v1063_v35, %v2381_v17 }
 0x1d6   : > { %v1065_v7 = vadd.f32 %v1064_v62, %v2391_v21 }
 0x1d8   : > { %v1066_v8 = vadd.f32 %v1065_v7, %v2398_v24 }
 0x1da   : > { %v1067_v9 = vadd.f32 %v1066_v8, %v1004_v28 }
 0x1dc   : > { %v1068_v3 = vadd.f32 %v1067_v9, %v1005_v31 }
 0x1de   : > { %v1069_v10 = vadd.f32 %v1068_v3, %v1006_v37 }
 0x1e0   : > { %v1070_v11 = vadd.f32 %v1069_v10, %v1007_v41 }
 0x1e2   : > { %v1071_v4 = vadd.f32 %v1070_v11, %v1008_v42 }
 0x1e4   : > { %v1072_v12 = vadd.f32 %v1071_v4, %v1009_v46 }
 0x1e6   : > { %v1073_v5 = vadd.f32 %v1072_v12, %v1010_v49 }
 0x1e8   : > { %v1074_v13 = vadd.f32 %v1073_v5, %v1011_v52 }
 0x1ea   : > { %v1075_v6 = vadd.f32 %v1074_v13, %v1012_v54 }
 0x1ec   : > { %v1076_v14 = vadd.f32 %v1075_v6, %v1013_v58 }
 0x1ee   : > { %v1077_v15 = vadd.f32 %v1076_v14, %v1014_v59 }
 0x1f0   : > { %v1078_v18 = vadd.f32 %v1077_v15, %v1015_v60 }
 0x1f2   : > { %v1079_v16 = vrot.slane %v1078_v18, 4 }
 0x1f4   : > { %v1080_v19 = vadd.f32 %v1079_v16, %v1078_v18 }
 0x1f6   : > { %v1081_v17 = vrot.slane %v1080_v19, 2 }
 0x1f8   : > { %v1082_v20 = vadd.f32 %v1081_v17, %v1080_v19 }
 0x1fa   : > { %v1083_v21 = vrot.slane %v1082_v20, 1 }
 0x1fc   : > { %v1084_v22 = vadd.f32 %v1083_v21, %v1082_v20 }
 0x1fe   : > { %1085 = vst [vmem:[%s2104_s12] sm:$0xff] %v1084_v22 }
 0x1ff PF: > { %s1324_s2 = sshll.u32 %s1847_s23, 12  ;;  %s1105_s27 = sshll.u32 %s2102_s28, 4  ;;  %s2455_s27 = int_to_ptr.vmem [resolvable:$true] %s1105_s27 }
 0x200   : > { %s2452_s17 = scalar_lea.hbm %s2546_s3, %s1324_s2  ;;  %s1087_s15 = scalar_lea.sflag [#allocation5], %s2098_s24 }
 0x201   : > { %s1701_s29 = scalar_lea.vmem %s2455_s27, 4096  ;;  %p2582_p3 = scmp.ne.s32.totalorder %s2565_s8, 0 }
 0x202   : > { %p1702_p2 = scmp.ne.s32.totalorder %s2455_s27, %s1701_s29  ;;  %s1869_s11 = smov [#allocation8]  }
 0x203   : > { %s1705_s10 = sshll.u32 %s1869_s11, 4  ;;  %s1706_s10 = int_to_ptr.vmem [resolvable:$false] %s1705_s10 }
 0x204   : > { %p1703_p6 = pnand %p1702_p2, %p2582_p3  ;;  %s1707_s14 = scalar_lea.vmem %s1706_s10, 8192 }
 0x205   : > { %p1708_p12 = scmp.lt.s32.totalorder %s2455_s27, %s1706_s10  ;;  %p1709_p0 = scmp.lt.s32.totalorder %s1707_s14, %s1701_s29 }
 0x206   : > { %p1704_p10 = pneg %p1703_p6 }
 0x207   : > { %p1710_p8 = por %p1709_p0, %p1708_p12 }
 0x209   : > { %p1711_p11 = pnand %p1710_p8, %p1704_p10 }
 0x20b   : > { %1714 = shalt.err (!%p1711_p11)
}
 0x20c   : > { %s1715_s28 = scalar_lea.hbm %s2452_s17, 4096  ;;  %s1719_s20 = scalar_lea.hbm %s2546_s3, 8192 }
 0x20d   : > { %p1716_p13 = scmp.ne.s32.totalorder %s2452_s17, %s1715_s28  ;;  %p1720_p1 = scmp.lt.u32.totalorder %s2452_s17, %s2546_s3 }
 0x20e   : > { %p1721_p5 = scmp.lt.u32.totalorder %s1719_s20, %s1715_s28  ;;  %p1723_p2 = scmp.lt.u32.totalorder %s1715_s28, %s2452_s17 }
 0x20f   : > { %p1717_p7 = pnand %p1716_p13, %p2582_p3 }
 0x210   : > { %p1722_p4 = por %p1721_p5, %p1720_p1 }
 0x211   : > { %p1718_p9 = pneg %p1717_p7 }
 0x212   : > { %p1724_p6 = por %p1723_p2, %p1722_p4 }
 0x214   : > { %p1725_p10 = pnand %p1724_p6, %p1718_p9 }
 0x216   : > { %1728 = shalt.err (!%p1725_p10)
}
 0x217   : > { %s1870_s2 = smov 128   ;;  %s1871_s5 = smov 8  }
 0x218   : > { %1459 = dma.vmem_to_hbm [thread:$0]  (%p2582_p3), %s2455_s27, 4096, %s2452_s17, %s1087_s15, %s1870_s2, %s1870_s2, %s1871_s5  }
 0x219   : > { %s1320_s1 = sshll.u32 %s1847_s23, 7  ;;  %s1121_s29 = sshll.u32 %s2104_s12, 4  ;;  %s1122_s29 = int_to_ptr.vmem [resolvable:$true] %s1121_s29 }
 0x21a   : > { %s2486_s14 = scalar_lea.hbm %s2547_s4, %s1320_s1  ;;  %s1092_s28 = scalar_lea.sflag [#allocation10], %s2098_s24 }
 0x21b   : > { %s1729_s30 = scalar_lea.vmem %s1122_s29, 128  ;;  %s1872_s7 = smov [#allocation9]  }
 0x21c   : > { %p1730_p12 = scmp.ne.s32.totalorder %s1122_s29, %s1729_s30  ;;  %s1733_s20 = sshll.u32 %s1872_s7, 4  ;;  %s1734_s20 = int_to_ptr.vmem [resolvable:$false] %s1733_s20 }
 0x21d   : > { %s1735_s6 = scalar_lea.vmem %s1734_s20, 256  ;;  %p1736_p11 = scmp.lt.s32.totalorder %s1122_s29, %s1734_s20 }
 0x21e   : > { %p1731_p0 = pnand %p1730_p12, %p2582_p3  ;;  %p1737_p13 = scmp.lt.s32.totalorder %s1735_s6, %s1729_s30 }
 0x220   : > { %p1732_p8 = pneg %p1731_p0  ;;  %p1738_p7 = por %p1737_p13, %p1736_p11 }
 0x222   : > { %p1739_p9 = pnand %p1738_p7, %p1732_p8 }
 0x224   : > { %1742 = shalt.err (!%p1739_p9)
}
 0x225   : > { %s1743_s23 = scalar_lea.hbm %s2486_s14, 128  ;;  %s1747_s17 = scalar_lea.hbm %s2547_s4, 256 }
 0x226   : > { %p1744_p1 = scmp.ne.s32.totalorder %s2486_s14, %s1743_s23  ;;  %p1748_p2 = scmp.lt.u32.totalorder %s2486_s14, %s2547_s4 }
 0x227   : > { %p1749_p6 = scmp.lt.u32.totalorder %s1747_s17, %s1743_s23  ;;  %p1751_p12 = scmp.lt.u32.totalorder %s1743_s23, %s2486_s14 }
 0x228   : > { %p1745_p5 = pnand %p1744_p1, %p2582_p3 }
 0x229   : > { %p1750_p10 = por %p1749_p6, %p1748_p2 }
 0x22a   : > { %p1746_p4 = pneg %p1745_p5 }
 0x22b   : > { %p1752_p0 = por %p1751_p12, %p1750_p10 }
 0x22d   : > { %p1753_p8 = pnand %p1752_p0, %p1746_p4 }
 0x22f   : > { %1756 = shalt.err (!%p1753_p8)
}
 0x230   : > { %1460 = dma.vmem_to_hbm [thread:$0]  (%p2582_p3), %s1122_s29, 128, %s2486_s14, %s1092_s28  }
 0x231 PF: > { %s2583_s9 = sld [smem:[#allocation15_spill]]  ;;  %s2584_s2 = sld [smem:[#allocation17_spill]] }
 0x232   : > { %p1481_p11 = scmp.ge.s32.totalorder %s1859_s26, 2 }
 0x237   : > { %s1133_s5 = sand.u32 1, %s2583_s9   ;;  %p2585_p13 = scmp.ne.s32.totalorder %s2584_s2, 0 }
 0x238   : > { %s1134_s1 = scalar_lea.sflag [#allocation5], %s1133_s5 }
 0x239   : > { %p1472_p7 = pnand %p1481_p11, %p2585_p13 }
 0x23b   : > { %1810 = dma.done.wait (!%p1472_p7), %s1134_s1, 4096  }
 0x23c   : > { %1812 = vsyncadd (!%p1472_p7), %s1134_s1, 4294963200  ;;  %s1143_s11 = scalar_lea.sflag [#allocation10], %s1133_s5 }
 0x23d   : > { %1814 = dma.done.wait (!%p1472_p7), %s1143_s11, 128  }
 0x23e   : > { %1816 = vsyncadd (!%p1472_p7), %s1143_s11, 4294967168  ;;  %s26_s26 = sadd.s32 1, %s1859_s26   ;;  %s2586_s2 = sld [smem:[#allocation16_spill]] }
 0x23f   : > { %p23_p9 = scmp.ge.s32.totalorder %s26_s26, 6   ;;  %s2587_s24 = sld [smem:[#allocation18_spill]] }
 0x240   : > { %s2588_s8 = sld [smem:[#allocation19_spill]]  ;;  %s2589_s17 = smov %s1823_s18 }
 0x241   : > { %s2590_s18 = smov %s1827_s19  ;;  %s2591_s19 = smov %s2049_s16 }
 0x242   : > { %s2592_s20 = smov %s1835_s21  ;;  %s2593_s21 = smov %s1839_s22 }
 0x243   : > { %s2594_s22 = smov %s2054_s13  ;;  %s2595_s23 = smov %s1855_s25 }
 0x244   :  { %25 = sbr.rel (!%p23_p9) target bundleno = 15 (0xf), region = 107 }
 0x246   : > { %s2596_s25 = smov %s2588_s8 }
 0x24b   :  { %1148 = vsyncpa [#allocation4], 1 }
 0x24c   :  { %1150 = vsyncpa [#allocation4 + $0x1], 1 }
 0x24d   :  { %1151 = vsyncpa [#allocation7], 1 }
 0x24e   :  { %1152 = vsyncpa [#allocation5], 1 }
 0x24f   :  { %1154 = vsyncpa [#allocation5 + $0x1], 1 }
 0x250   :  { %1155 = vsyncpa [#allocation10], 1 }
 0x251   :  { %1157 = vsyncpa [#allocation10 + $0x1], 1 }

</bundles_post_ra>
